<compile_context>
chip_gen: v6e
topology: v6e:2x2x1
jax: 0.10.0
libtpu: 0.0.40
codegen_flags: <defaults>
</compile_context>

<pallas_src>
import jax
import jax.numpy as jnp
from jax.experimental import pallas as pl
from jax.experimental.pallas import tpu as pltpu


def _round_up(x, m):
    return ((x + m - 1) // m) * m


def _make_sepconv_kernel(k, h_out, w_out, batch_block, c_in, c_out):
    def kernel(x_ref, dw_ref, pw_ref, o_ref):
        x = x_ref[...]              # (B, Hp, Wp_al, Cin) f32, spatially pre-padded
        wdw = dw_ref[...]           # (k*k, Cin) depthwise taps
        wp_al = x.shape[2]

        # ---- depthwise: k*k shifted multiply-adds, kept entirely in VMEM ----
        acc = None
        for dx in range(k):
            if dx == 0:
                xs = x
            else:
                # XLU sublane rotate instead of a misaligned W slice.  Wrapped
                # columns appear only at indices >= Wp - dx, which are dropped
                # by the `kept` slice below, so this is exact.
                xs = pltpu.roll(x, shift=wp_al - dx, axis=2)
            for dy in range(k):
                wv = wdw[dy * k + dx].reshape(1, 1, 1, c_in)
                term = xs[:, dy:dy + h_out, :, :] * wv      # H slice: leading dim, cheap
                acc = term if acc is None else acc + term

        kept = acc[:, :, :w_out, :]                          # slice starts at 0 (aligned)

        # ---- pointwise 1x1: one MXU matmul over all pixels, f32 accumulate ----
        y = jnp.dot(kept.reshape(batch_block * h_out * w_out, c_in), pw_ref[...],
                    preferred_element_type=jnp.float32)
        o_ref[...] = y.reshape(batch_block, h_out, w_out, c_out).astype(o_ref.dtype)

    return kernel


def separable_conv2d(x_nchw, dw_weight, pw_weight, *, stride=1, padding=0,
                     dilation=1, batch_block=None):
    """Fused SeparableConv2d forward (bias=False), NCHW in / NCHW out.

    dw_weight: (Cin, 1, k, k)  (PyTorch grouped-conv layout, groups=Cin)
    pw_weight: (Cout, Cin, 1, 1)
    batch_block: samples per grid step (None = whole batch in one step; use 1
                 on v7x to spread the batch across both TensorCores).
    """
    # TODO(synk): stride != 1 / dilation != 1 not implemented (module defaults
    # and all uses in the surrounding Net are stride=1, dilation=1).
    assert stride == 1 and dilation == 1

    n, c_in, h, w = x_nchw.shape
    k = dw_weight.shape[-1]
    c_out = pw_weight.shape[0]
    h_out = h + 2 * padding - k + 1
    w_out = w + 2 * padding - k + 1

    if batch_block is None:
        batch_block = n
    assert n % batch_block == 0

    hp = h + 2 * padding
    wp = w + 2 * padding
    wp_al = _round_up(wp, 8)          # sublane-aligned padded width

    # NCHW -> NHWC, zero-pad spatially (conv padding + width alignment).
    x = jnp.transpose(x_nchw, (0, 2, 3, 1)).astype(jnp.float32)
    xp = jnp.pad(x, ((0, 0), (padding, padding),
                     (padding, padding + (wp_al - wp)), (0, 0)))

    dw = jnp.transpose(dw_weight.reshape(c_in, k, k), (1, 2, 0)).reshape(k * k, c_in)
    dw = dw.astype(jnp.float32)                                  # (k*k, Cin)
    pw = pw_weight.reshape(c_out, c_in).T.astype(jnp.float32)    # (Cin, Cout)

    m = n * h_out * w_out
    cost = pl.CostEstimate(
        flops=2 * m * c_in * c_out + 2 * m * k * k * c_in,
        transcendentals=0,
        bytes_accessed=4 * (xp.size + dw.size + pw.size + m * c_out))

    out = pl.pallas_call(
        _make_sepconv_kernel(k, h_out, w_out, batch_block, c_in, c_out),
        out_shape=jax.ShapeDtypeStruct((n, h_out, w_out, c_out), jnp.float32),
        grid_spec=pltpu.PrefetchScalarGridSpec(
            num_scalar_prefetch=0,
            grid=(n // batch_block,),
            in_specs=[
                pl.BlockSpec((batch_block, hp, wp_al, c_in), lambda b: (b, 0, 0, 0)),
                pl.BlockSpec((k * k, c_in), lambda b: (0, 0)),
                pl.BlockSpec((c_in, c_out), lambda b: (0, 0)),
            ],
            out_specs=pl.BlockSpec((batch_block, h_out, w_out, c_out),
                                   lambda b: (b, 0, 0, 0)),
        ),
        compiler_params=pltpu.CompilerParams(dimension_semantics=("parallel",)),
        cost_estimate=cost,
    )(xp, dw, pw)

    return jnp.transpose(out, (0, 3, 1, 2))   # NHWC -> NCHW


def _reference_separable_conv2d(x, dw, pw, *, padding=0):
    """Pure-JAX reference (same math as the PyTorch module, bias=False)."""
    y = jax.lax.conv_general_dilated(
        x, dw, window_strides=(1, 1),
        padding=[(padding, padding), (padding, padding)],
        dimension_numbers=("NCHW", "OIHW", "NCHW"),
        feature_group_count=x.shape[1],
        precision=jax.lax.Precision.HIGHEST)
    y = jax.lax.conv_general_dilated(
        y, pw, window_strides=(1, 1), padding="VALID",
        dimension_numbers=("NCHW", "OIHW", "NCHW"),
        precision=jax.lax.Precision.HIGHEST)
    return y


if __name__ == "__main__":
    key = jax.random.PRNGKey(0)
    k1, k2, k3, k4, k5 = jax.random.split(key, 5)

    # Case 1: SeparableConv2d(32, 64, kernel_size=3, padding=1), bias=False.
    N, Cin, H, W = 2, 32, 16, 16
    Cout, ksz, pad = 64, 3, 1
    x = jax.random.normal(k1, (N, Cin, H, W), dtype=jnp.float32)
    dw_w = 0.1 * jax.random.normal(k2, (Cin, 1, ksz, ksz), dtype=jnp.float32)
    pw_w = 0.1 * jax.random.normal(k3, (Cout, Cin, 1, 1), dtype=jnp.float32)

    out = jax.block_until_ready(separable_conv2d(x, dw_w, pw_w, padding=pad))
    ref = _reference_separable_conv2d(x, dw_w, pw_w, padding=pad)
    assert out.shape == (N, Cout, H, W)
    assert bool(jnp.all(jnp.isfinite(out)))
    assert float(jnp.max(jnp.abs(out - ref))) < 2e-2

    # Case 2: default SeparableConv2d(32, 16) (kernel_size=1, padding=0).
    dw1 = 0.1 * jax.random.normal(k4, (Cin, 1, 1, 1), dtype=jnp.float32)
    pw1 = 0.1 * jax.random.normal(k5, (16, Cin, 1, 1), dtype=jnp.float32)
    out1 = jax.block_until_ready(separable_conv2d(x, dw1, pw1))
    ref1 = _reference_separable_conv2d(x, dw1, pw1, padding=0)
    assert out1.shape == (N, 16, H, W)
    assert bool(jnp.all(jnp.isfinite(out1)))
    assert float(jnp.max(jnp.abs(out1 - ref1))) < 2e-2

    print("KERNEL_OK")
</pallas_src>

<mosaic_0001>
module attributes {stable_mosaic.version = 11 : i64} {
  func.func @kernel(%arg0: i32, %arg1: memref<2x18x24x32xf32, #tpu.memory_space<vmem>>, %arg2: memref<9x32xf32, #tpu.memory_space<vmem>>, %arg3: memref<32x64xf32, #tpu.memory_space<vmem>>, %arg4: memref<2x16x16x64xf32, #tpu.memory_space<vmem>>) attributes {dimension_semantics = [#tpu.dimension_semantics<parallel>], iteration_bounds = array<i64: 1>, scalar_prefetch = 0 : i64, scratch_operands = 0 : i64, tpu.core_type = #tpu.core_type<tc>, window_params = [{transform_indices = @transform_0, window_bounds = array<i64: 2, 18, 24, 32>}, {pipeline_mode = #tpu.pipeline_mode<synchronous>, transform_indices = @transform_1, window_bounds = array<i64: 9, 32>}, {pipeline_mode = #tpu.pipeline_mode<synchronous>, transform_indices = @transform_2, window_bounds = array<i64: 32, 64>}, {transform_indices = @transform_3, window_bounds = array<i64: 2, 16, 16, 64>}]} {
    %c0 = arith.constant 0 : index
    %c0_0 = arith.constant 0 : index
    %c0_1 = arith.constant 0 : index
    %c0_2 = arith.constant 0 : index
    %0 = vector.load %arg1[%c0, %c0_0, %c0_1, %c0_2] : memref<2x18x24x32xf32, #tpu.memory_space<vmem>>, vector<2x18x24x32xf32>
    %c0_3 = arith.constant 0 : index
    %c0_4 = arith.constant 0 : index
    %1 = vector.load %arg2[%c0_3, %c0_4] : memref<9x32xf32, #tpu.memory_space<vmem>>, vector<9x32xf32>
    %2 = vector.extract_strided_slice %1 {offsets = [0, 0], sizes = [1, 32], strides = [1, 1]} : vector<9x32xf32> to vector<1x32xf32>
    %3 = vector.shape_cast %2 : vector<1x32xf32> to vector<32xf32>
    %4 = vector.shape_cast %3 : vector<32xf32> to vector<1x1x1x32xf32>
    %5 = vector.extract_strided_slice %0 {offsets = [0, 0, 0, 0], sizes = [2, 16, 24, 32], strides = [1, 1, 1, 1]} : vector<2x18x24x32xf32> to vector<2x16x24x32xf32>
    %6 = vector.broadcast %4 : vector<1x1x1x32xf32> to vector<2x16x24x32xf32>
    %7 = arith.mulf %5, %6 : vector<2x16x24x32xf32>
    %8 = vector.extract_strided_slice %1 {offsets = [3, 0], sizes = [1, 32], strides = [1, 1]} : vector<9x32xf32> to vector<1x32xf32>
    %9 = vector.shape_cast %8 : vector<1x32xf32> to vector<32xf32>
    %10 = vector.shape_cast %9 : vector<32xf32> to vector<1x1x1x32xf32>
    %11 = vector.extract_strided_slice %0 {offsets = [0, 1, 0, 0], sizes = [2, 16, 24, 32], strides = [1, 1, 1, 1]} : vector<2x18x24x32xf32> to vector<2x16x24x32xf32>
    %12 = vector.broadcast %10 : vector<1x1x1x32xf32> to vector<2x16x24x32xf32>
    %13 = arith.mulf %11, %12 : vector<2x16x24x32xf32>
    %14 = arith.addf %7, %13 : vector<2x16x24x32xf32>
    %15 = vector.extract_strided_slice %1 {offsets = [6, 0], sizes = [1, 32], strides = [1, 1]} : vector<9x32xf32> to vector<1x32xf32>
    %16 = vector.shape_cast %15 : vector<1x32xf32> to vector<32xf32>
    %17 = vector.shape_cast %16 : vector<32xf32> to vector<1x1x1x32xf32>
    %18 = vector.extract_strided_slice %0 {offsets = [0, 2, 0, 0], sizes = [2, 16, 24, 32], strides = [1, 1, 1, 1]} : vector<2x18x24x32xf32> to vector<2x16x24x32xf32>
    %19 = vector.broadcast %17 : vector<1x1x1x32xf32> to vector<2x16x24x32xf32>
    %20 = arith.mulf %18, %19 : vector<2x16x24x32xf32>
    %21 = arith.addf %14, %20 : vector<2x16x24x32xf32>
    %c23_i32 = arith.constant 23 : i32
    %22 = tpu.dynamic_rotate %0 by %c23_i32 dim 2 : vector<2x18x24x32xf32>, i32 -> vector<2x18x24x32xf32>
    %23 = vector.extract_strided_slice %1 {offsets = [1, 0], sizes = [1, 32], strides = [1, 1]} : vector<9x32xf32> to vector<1x32xf32>
    %24 = vector.shape_cast %23 : vector<1x32xf32> to vector<32xf32>
    %25 = vector.shape_cast %24 : vector<32xf32> to vector<1x1x1x32xf32>
    %26 = vector.extract_strided_slice %22 {offsets = [0, 0, 0, 0], sizes = [2, 16, 24, 32], strides = [1, 1, 1, 1]} : vector<2x18x24x32xf32> to vector<2x16x24x32xf32>
    %27 = vector.broadcast %25 : vector<1x1x1x32xf32> to vector<2x16x24x32xf32>
    %28 = arith.mulf %26, %27 : vector<2x16x24x32xf32>
    %29 = arith.addf %21, %28 : vector<2x16x24x32xf32>
    %30 = vector.extract_strided_slice %1 {offsets = [4, 0], sizes = [1, 32], strides = [1, 1]} : vector<9x32xf32> to vector<1x32xf32>
    %31 = vector.shape_cast %30 : vector<1x32xf32> to vector<32xf32>
    %32 = vector.shape_cast %31 : vector<32xf32> to vector<1x1x1x32xf32>
    %33 = vector.extract_strided_slice %22 {offsets = [0, 1, 0, 0], sizes = [2, 16, 24, 32], strides = [1, 1, 1, 1]} : vector<2x18x24x32xf32> to vector<2x16x24x32xf32>
    %34 = vector.broadcast %32 : vector<1x1x1x32xf32> to vector<2x16x24x32xf32>
    %35 = arith.mulf %33, %34 : vector<2x16x24x32xf32>
    %36 = arith.addf %29, %35 : vector<2x16x24x32xf32>
    %37 = vector.extract_strided_slice %1 {offsets = [7, 0], sizes = [1, 32], strides = [1, 1]} : vector<9x32xf32> to vector<1x32xf32>
    %38 = vector.shape_cast %37 : vector<1x32xf32> to vector<32xf32>
    %39 = vector.shape_cast %38 : vector<32xf32> to vector<1x1x1x32xf32>
    %40 = vector.extract_strided_slice %22 {offsets = [0, 2, 0, 0], sizes = [2, 16, 24, 32], strides = [1, 1, 1, 1]} : vector<2x18x24x32xf32> to vector<2x16x24x32xf32>
    %41 = vector.broadcast %39 : vector<1x1x1x32xf32> to vector<2x16x24x32xf32>
    %42 = arith.mulf %40, %41 : vector<2x16x24x32xf32>
    %43 = arith.addf %36, %42 : vector<2x16x24x32xf32>
    %c22_i32 = arith.constant 22 : i32
    %44 = tpu.dynamic_rotate %0 by %c22_i32 dim 2 : vector<2x18x24x32xf32>, i32 -> vector<2x18x24x32xf32>
    %45 = vector.extract_strided_slice %1 {offsets = [2, 0], sizes = [1, 32], strides = [1, 1]} : vector<9x32xf32> to vector<1x32xf32>
    %46 = vector.shape_cast %45 : vector<1x32xf32> to vector<32xf32>
    %47 = vector.shape_cast %46 : vector<32xf32> to vector<1x1x1x32xf32>
    %48 = vector.extract_strided_slice %44 {offsets = [0, 0, 0, 0], sizes = [2, 16, 24, 32], strides = [1, 1, 1, 1]} : vector<2x18x24x32xf32> to vector<2x16x24x32xf32>
    %49 = vector.broadcast %47 : vector<1x1x1x32xf32> to vector<2x16x24x32xf32>
    %50 = arith.mulf %48, %49 : vector<2x16x24x32xf32>
    %51 = arith.addf %43, %50 : vector<2x16x24x32xf32>
    %52 = vector.extract_strided_slice %1 {offsets = [5, 0], sizes = [1, 32], strides = [1, 1]} : vector<9x32xf32> to vector<1x32xf32>
    %53 = vector.shape_cast %52 : vector<1x32xf32> to vector<32xf32>
    %54 = vector.shape_cast %53 : vector<32xf32> to vector<1x1x1x32xf32>
    %55 = vector.extract_strided_slice %44 {offsets = [0, 1, 0, 0], sizes = [2, 16, 24, 32], strides = [1, 1, 1, 1]} : vector<2x18x24x32xf32> to vector<2x16x24x32xf32>
    %56 = vector.broadcast %54 : vector<1x1x1x32xf32> to vector<2x16x24x32xf32>
    %57 = arith.mulf %55, %56 : vector<2x16x24x32xf32>
    %58 = arith.addf %51, %57 : vector<2x16x24x32xf32>
    %59 = vector.extract_strided_slice %1 {offsets = [8, 0], sizes = [1, 32], strides = [1, 1]} : vector<9x32xf32> to vector<1x32xf32>
    %60 = vector.shape_cast %59 : vector<1x32xf32> to vector<32xf32>
    %61 = vector.shape_cast %60 : vector<32xf32> to vector<1x1x1x32xf32>
    %62 = vector.extract_strided_slice %44 {offsets = [0, 2, 0, 0], sizes = [2, 16, 24, 32], strides = [1, 1, 1, 1]} : vector<2x18x24x32xf32> to vector<2x16x24x32xf32>
    %63 = vector.broadcast %61 : vector<1x1x1x32xf32> to vector<2x16x24x32xf32>
    %64 = arith.mulf %62, %63 : vector<2x16x24x32xf32>
    %65 = arith.addf %58, %64 : vector<2x16x24x32xf32>
    %66 = vector.extract_strided_slice %65 {offsets = [0, 0, 0, 0], sizes = [2, 16, 16, 32], strides = [1, 1, 1, 1]} : vector<2x16x24x32xf32> to vector<2x16x16x32xf32>
    %67 = vector.shape_cast %66 : vector<2x16x16x32xf32> to vector<512x32xf32>
    %c0_5 = arith.constant 0 : index
    %c0_6 = arith.constant 0 : index
    %68 = vector.load %arg3[%c0_5, %c0_6] : memref<32x64xf32, #tpu.memory_space<vmem>>, vector<32x64xf32>
    %cst = arith.constant dense<0.000000e+00> : vector<512x64xf32>
    %69 = tpu.matmul %67, %68, %cst {dimension_numbers = #tpu.dot_dimension_numbers<[1], [0], [0], [1], [0, 0, 1, 1], [], []>} : vector<512x32xf32>, vector<32x64xf32>, vector<512x64xf32> -> vector<512x64xf32>
    %70 = vector.shape_cast %69 : vector<512x64xf32> to vector<2x16x16x64xf32>
    %c0_7 = arith.constant 0 : index
    %c0_8 = arith.constant 0 : index
    %c0_9 = arith.constant 0 : index
    %c0_10 = arith.constant 0 : index
    %71 = vector.load %arg4[%c0_7, %c0_8, %c0_9, %c0_10] : memref<2x16x16x64xf32, #tpu.memory_space<vmem>>, vector<2x16x16x64xf32>
    tpu.vector_store %arg4[%c0_7, %c0_8, %c0_9, %c0_10], %70 {strides = array<i32>} : memref<2x16x16x64xf32, #tpu.memory_space<vmem>>, vector<2x16x16x64xf32>,
    return
  }
  func.func @transform_0(%arg0: i32) -> (i32, i32, i32, i32) {
    %c0_i32 = arith.constant 0 : i32
    %c0_i32_0 = arith.constant 0 : i32
    %c0_i32_1 = arith.constant 0 : i32
    %c0_i32_2 = arith.constant 0 : i32
    return %arg0, %c0_i32, %c0_i32_0, %c0_i32_1 : i32, i32, i32, i32
  }
  func.func @transform_1(%arg0: i32) -> (i32, i32) {
    %c0_i32 = arith.constant 0 : i32
    %c0_i32_0 = arith.constant 0 : i32
    %c0_i32_1 = arith.constant 0 : i32
    return %c0_i32, %c0_i32_0 : i32, i32
  }
  func.func @transform_2(%arg0: i32) -> (i32, i32) {
    %c0_i32 = arith.constant 0 : i32
    %c0_i32_0 = arith.constant 0 : i32
    %c0_i32_1 = arith.constant 0 : i32
    return %c0_i32, %c0_i32_0 : i32, i32
  }
  func.func @transform_3(%arg0: i32) -> (i32, i32, i32, i32) {
    %c0_i32 = arith.constant 0 : i32
    %c0_i32_0 = arith.constant 0 : i32
    %c0_i32_1 = arith.constant 0 : i32
    %c0_i32_2 = arith.constant 0 : i32
    return %arg0, %c0_i32, %c0_i32_0, %c0_i32_1 : i32, i32, i32, i32
  }
}

</mosaic_0001>

<bundles_post_ra>
// kernel: tpu_custom_call.1
= control target key start
LH: loop header
LB: loop body
LE: loop exit
PB: predicated region body
PF: predicated region fallthrough
CT: control target
= control target key end

     0   :  { %8 = vsyncpa [#allocation3], 0  ;;  %s5018_s0 = inlined_call_operand.hbm [shape: f32[2,18,24,32], index: 0, kind: input, shape index: {}]   ;;  %s5019_s1 = inlined_call_operand.hbm [shape: f32[9,32], index: 1, kind: input, shape index: {}]   ;;  %s5020_s2 = inlined_call_operand.hbm [shape: f32[32,64], index: 2, kind: input, shape index: {}]   ;;  %s5021_s3 = inlined_call_operand.hbm [shape: f32[2,16,16,64], index: 3, kind: output, shape index: {}]  }
   0x1   :  { %9 = vsyncpa [#allocation6], 0 }
   0x2   :  { %10 = vsyncpa [#allocation4], 0  ;;  %s2659_s12 = smov [#allocation5]   ;;  %s2660_s14 = smov [#allocation2]  }
   0x3   :  { %s28_s13 = sshll.u32 %s2659_s12, 4  ;;  %s16_s15 = sshll.u32 %s2660_s14, 4  ;;  %s29_s13 = int_to_ptr.vmem [resolvable:$true] %s28_s13  ;;  %s17_s15 = int_to_ptr.vmem [resolvable:$true] %s16_s15 }
   0x4   :  { %s2581_s16 = scalar_lea.vmem %s29_s13, 256  ;;  %p2586_p1 = scmp.lt.s32.totalorder %s29_s13, %s29_s13 }
   0x5   :  { %p2582_p0 = scmp.ne.s32.totalorder %s29_s13, %s2581_s16  ;;  %p2587_p2 = scmp.lt.s32.totalorder %s2581_s16, %s2581_s16 }
   0x7   :  { %p2588_p3 = por %p2587_p2, %p2586_p1 }
   0x9   :  { %p2589_p4 = pnand %p2588_p3, %p2582_p0 }
   0xb   :  { %2592 = shalt.err (!%p2589_p4)
}
   0xc   :  { %s2661_s17 = smov 128   ;;  %s2662_s18 = smov 8  }
   0xd   :  { %34 = dma.hbm_to_vmem [thread:$0]  %s5019_s1, 256, %s29_s13, [#allocation6], %s2661_s17, %s2661_s17, %s2662_s18  }
   0xe   :  { %s2601_s21 = scalar_lea.vmem %s17_s15, 13824  ;;  %p2606_p6 = scmp.lt.s32.totalorder %s17_s15, %s17_s15 }
   0xf   :  { %p2602_p5 = scmp.ne.s32.totalorder %s17_s15, %s2601_s21  ;;  %p2607_p7 = scmp.lt.s32.totalorder %s2601_s21, %s2601_s21 }
  0x11   :  { %p2608_p8 = por %p2607_p7, %p2606_p6 }
  0x13   :  { %p2609_p9 = pnand %p2608_p8, %p2602_p5 }
  0x15   :  { %2612 = shalt.err (!%p2609_p9)
}
  0x16   :  { %22 = dma.hbm_to_vmem [thread:$0]  %s5018_s0, 13824, %s17_s15, [#allocation3], %s2661_s17, %s2661_s17, %s2662_s18  }
  0x17   :  { %s2663_s24 = smov [#allocation7]  }
  0x18   :  { %s40_s25 = sshll.u32 %s2663_s24, 4  ;;  %s41_s25 = int_to_ptr.vmem [resolvable:$true] %s40_s25 }
  0x19   :  { %s2621_s26 = scalar_lea.vmem %s41_s25, 512  ;;  %p2626_p11 = scmp.lt.s32.totalorder %s41_s25, %s41_s25 }
  0x1a   :  { %p2622_p10 = scmp.ne.s32.totalorder %s41_s25, %s2621_s26  ;;  %p2627_p12 = scmp.lt.s32.totalorder %s2621_s26, %s2621_s26 }
  0x1c   :  { %p2628_p13 = por %p2627_p12, %p2626_p11 }
  0x1e   :  { %p2629_p0 = pnand %p2628_p13, %p2622_p10 }
  0x20   :  { %2632 = shalt.err (!%p2629_p0)
}
  0x21   :  { %46 = dma.hbm_to_vmem [thread:$0]  %s5020_s2, 512, %s41_s25, [#allocation6], %s2661_s17, %s2661_s17, %s2662_s18  }
  0x22   :  { %2653 = dma.done.wait [#allocation3], 13824  }
  0x23   :  { %2654 = vsyncadd [#allocation3], 4294953472 }
  0x24   :  { %2655 = dma.done.wait [#allocation6], 768  }
  0x25   :  { %2656 = vsyncadd [#allocation6], 4294966528  ;;  %v166_v0 = vlaneseq  ;;  %v1657_v2 = vld [vmem:[#allocation7 + $0x18] sm:$0xff]  ;;  %v1656_v3 = vld [vmem:[#allocation7 + $0x10] sm:$0xff]  ;;  %vm1658_vm2 = vcmask 261120   ;;  %vm2236_vm3 = vcmask 523264  }
  0x26   :  { %2452 = vmatprep.subr.mxu0 %v1657_v2  ;;  %2556 = vmatprep.subr.mxu1 %v1657_v2  ;;  %v1655_v6 = vld [vmem:[#allocation7 + $0x8] sm:$0xff]  ;;  %v2707_v7 = vld [vmem:[#allocation2] sm:$0xff]  ;;  %v2709_v8 = vld [vmem:[#allocation2 + $0x8] sm:$0xff]  ;;  %s2664_s0 = smov [#allocation8]  }
  0x27   :  { %v2703_v1 = vshrl.u32 %v166_v0, 7  ;;  %2453 = vmatpush3.msra.mxu0 %v1657_v2  ;;  %2560 = vmatpush3.msra.mxu1 %v1657_v2  ;;  %v2714_v11 = vld [vmem:[#allocation2 + $0x18] sm:$0xff]  ;;  %v2716_v12 = vld [vmem:[#allocation2 + $0x20] sm:$0xff]  ;;  %v2718_v13 = vld [vmem:[#allocation2 + $0x30] sm:$0xff]  ;;  %v498_v14 = vrot.slane %v2707_v7, 1  ;;  %v534_v15 = vrot.slane %v2709_v8, 1 }
  0x28   :  { %2454 = vmatprep.subr.mxu0 %v1656_v3  ;;  %2557 = vmatprep.subr.mxu1 %v1656_v3  ;;  %v2723_v17 = vld [vmem:[#allocation2 + $0x38] sm:$0xff]  ;;  %v2725_v18 = vld [vmem:[#allocation2 + $0x48] sm:$0xff]  ;;  %v2727_v19 = vld [vmem:[#allocation2 + $0x50] sm:$0xff]  ;;  %v499_v20 = vrot.slane %v2714_v11, 1  ;;  %v500_v21 = vrot.slane %v2718_v13, 1  ;;  %v535_v22 = vrot.slane %v2716_v12, 1 }
  0x29   :  { %v168_v4 = vsub.s32 0, %v2703_v1  ;;  %v236_v5 = vsub.s32 3, %v2703_v1  ;;  %v368_v9 = vsub.s32 6, %v2703_v1  ;;  %vm608_vm0 = vcmp.lt.s32.totalorder %v2703_v1, 7  ;;  %2455 = vmatpush3.msra.mxu0 %v1656_v3  ;;  %2561 = vmatpush3.msra.mxu1 %v1656_v3  ;;  %v1654_v23 = vld [vmem:[#allocation7] sm:$0xff]  ;;  %v2732_v24 = vld [vmem:[#allocation5] sm:$0xff] }
  0x2a   :  { %v683_v10 = vsub.s32 1, %v2703_v1  ;;  %v815_v16 = vsub.s32 4, %v2703_v1  ;;  %v501_v25 = vrot.slane %v2725_v18, 1  ;;  %v536_v26 = vrot.slane %v2723_v17, 1  ;;  %2456 = vmatprep.subr.mxu0 %v1655_v6  ;;  %2558 = vmatprep.subr.mxu1 %v1655_v6  ;;  %v2746_v33 = vld [vmem:[#allocation2 + $0x60] sm:$0xff]  ;;  %v2760_v38 = vld [vmem:[#allocation2 + $0x68] sm:$0xff] }
  0x2b   :  { %v5023_v27 = vrot.slane %v2727_v19, 1  ;;  %v947_v28 = vsub.s32 7, %v2703_v1  ;;  %v2739_v29 = vrot.slane %v2732_v24, %v168_v4  ;;  %v2742_v30 = vrot.slane %v2732_v24, %v236_v5  ;;  %2457 = vmatpush3.msra.mxu0 %v1655_v6  ;;  %2562 = vmatpush3.msra.mxu1 %v1655_v6  ;;  %s2306_s2 = sshll.u32 %s2664_s0, 4  ;;  %s2307_s2 = int_to_ptr.vmem [resolvable:$true] %s2306_s2 }
  0x2c   :  { %v1260_v31 = vsub.s32 2, %v2703_v1  ;;  %v1392_v32 = vsub.s32 5, %v2703_v1  ;;  %v2749_v34 = vrot.slane %v2732_v24, %v368_v9  ;;  %v645_v35 = vsel %vm608_vm0, %v498_v14, %v534_v15  ;;  %2458 = vmatprep.subr.mxu0 %v1654_v23  ;;  %2559 = vmatprep.subr.mxu1 %v1654_v23  ;;  %s2633_s28 = scalar_lea.vmem %s2307_s2, 8192  ;;  %p2638_p2 = scmp.lt.s32.totalorder %s2307_s2, %s2307_s2 }
  0x2d   :  { %v646_v36 = vsel %vm608_vm0, %v499_v20, %v535_v22  ;;  %v1077_v37 = vrot.slane %v2707_v7, 2  ;;  %v170_v39 = vmul.f32 %v2739_v29, %v2707_v7  ;;  %v172_v40 = vmul.f32 %v2739_v29, %v2714_v11  ;;  %2459 = vmatpush3.msra.mxu0 %v1654_v23  ;;  %2563 = vmatpush3.msra.mxu1 %v1654_v23  ;;  %p2634_p1 = scmp.ne.s32.totalorder %s2307_s2, %s2633_s28  ;;  %p2639_p3 = scmp.lt.s32.totalorder %s2633_s28, %s2633_s28 }
  0x2e   :  { %v502_v41 = vrot.slane %v2746_v33, 1  ;;  %v647_v42 = vsel %vm608_vm0, %v500_v21, %v536_v26  ;;  %v171_v43 = vmul.f32 %v2739_v29, %v2709_v8  ;;  %v174_v44 = vmul.f32 %v2739_v29, %v2718_v13 }
  0x2f   :  { %v5022_v45 = vrot.slane %v2760_v38, 1  ;;  %v648_v46 = vsel %vm608_vm0, %v501_v25, %v5023_v27  ;;  %vm1185_vm1 = vcmp.lt.s32.totalorder %v2703_v1, 6  ;;  %v173_v47 = vmul.f32 %v2739_v29, %v2716_v12  ;;  %p2640_p4 = por %p2639_p3, %p2638_p2 }
  0x30   :  { %v238_v48 = vmul.f32 %v2742_v30, %v2714_v11  ;;  %v240_v49 = vmul.f32 %v2742_v30, %v2718_v13  ;;  %v1078_v50 = vrot.slane %v2714_v11, 2  ;;  %v242_v51 = vmul.f32 %v2742_v30, %v2725_v18 }
  0x31   :  { %v370_v52 = vmul.f32 %v2749_v34, %v2718_v13  ;;  %v372_v53 = vmul.f32 %v2749_v34, %v2725_v18  ;;  %v374_v54 = vmul.f32 %v2749_v34, %v2746_v33  ;;  %v2798_v55 = vmul.f32 %v2739_v29, %v2723_v17  ;;  %p2641_p5 = pnand %p2640_p4, %p2634_p1 }
  0x32   :  { %v302_v56 = vadd.f32 %v238_v48, %v170_v39  ;;  %v304_v57 = vadd.f32 %v240_v49, %v172_v40  ;;  %v1079_v58 = vrot.slane %v2718_v13, 2  ;;  %v239_v59 = vmul.f32 %v2742_v30, %v2716_v12 }
  0x33   :  { %v306_v60 = vadd.f32 %v242_v51, %v174_v44  ;;  %v2806_v61 = vrot.slane %v2732_v24, %v683_v10  ;;  %v2809_v62 = vrot.slane %v2732_v24, %v815_v16  ;;  %v2815_v2 = vsel %vm608_vm0, %v502_v41, %v5022_v45  ;;  %v2853_v51 = vld [vmem:[#allocation2 + $0x1b0] sm:$0xff] }
  0x34   :  { %v434_v63 = vadd.f32 %v370_v52, %v302_v56  ;;  %v436_v0 = vadd.f32 %v372_v53, %v304_v57  ;;  %v2818_v3 = vrot.slane %v2732_v24, %v947_v28  ;;  %v241_v9 = vmul.f32 %v2742_v30, %v2723_v17  ;;  %v2855_v52 = vld [vmem:[#allocation5 + $0x8] ss:$0 sm:$0xff]  ;;  %v2870_v57 = vld [vmem:[#allocation2 + $0x1b8] sm:$0xff] }
  0x35   :  { %v438_v4 = vadd.f32 %v374_v54, %v306_v60  ;;  %v685_v5 = vmul.f32 %v2806_v61, %v645_v35  ;;  %v687_v6 = vmul.f32 %v2806_v61, %v646_v36  ;;  %v689_v7 = vmul.f32 %v2806_v61, %v647_v42 }
  0x36   :  { %v817_v10 = vmul.f32 %v2809_v62, %v646_v36  ;;  %v819_v11 = vmul.f32 %v2809_v62, %v647_v42  ;;  %v1113_v13 = vrot.slane %v2709_v8, 2  ;;  %v821_v21 = vmul.f32 %v2809_v62, %v648_v46 }
  0x37   :  { %v749_v14 = vadd.f32 %v685_v5, %v434_v63  ;;  %v751_v16 = vadd.f32 %v687_v6, %v436_v0  ;;  %v753_v20 = vadd.f32 %v689_v7, %v438_v4  ;;  %v949_v23 = vmul.f32 %v2818_v3, %v647_v42  ;;  %v2876_v63 = vld [vmem:[#allocation2 + $0x1d0] sm:$0xff]  ;;  %v2884_v5 = vld [vmem:[#allocation2 + $0x1e0] sm:$0xff]  ;;  %v2888_v7 = vld [vmem:[#allocation2 + $0x1e8] sm:$0xff] }
  0x38   :  { %v951_v25 = vmul.f32 %v2818_v3, %v648_v46  ;;  %v953_v28 = vmul.f32 %v2818_v3, %v2815_v2  ;;  %v5030_v35 = vrot.slane %v2716_v12, 2  ;;  %v5029_v41 = vrot.slane %v2723_v17, 2 }
  0x39   :  { %v881_v39 = vadd.f32 %v817_v10, %v749_v14  ;;  %v883_v36 = vadd.f32 %v819_v11, %v751_v16  ;;  %v885_v40 = vadd.f32 %v821_v21, %v753_v20  ;;  %v1222_v44 = vsel %vm1185_vm1, %v1077_v37, %v1113_v13  ;;  %v2900_v21 = vld [vmem:[#allocation2 + $0x210] sm:$0xff] }
  0x3a   :  { %v1223_v42 = vsel %vm1185_vm1, %v1078_v50, %v5030_v35  ;;  %v2846_v48 = vrot.slane %v2732_v24, %v1260_v31  ;;  %v2851_v49 = vrot.slane %v2732_v24, %v1392_v32  ;;  %v2857_v37 = vadd.f32 %v239_v59, %v171_v43  ;;  %v2872_v43 = vld [vmem:[#allocation2 + $0x1c8] sm:$0xff] }
  0x3b   :  { %v2859_v53 = vadd.f32 %v241_v9, %v173_v47  ;;  %v1013_v54 = vadd.f32 %v949_v23, %v881_v39  ;;  %v1224_v31 = vsel %vm1185_vm1, %v1079_v58, %v5029_v41  ;;  %v2866_v50 = vmul.f32 %v2806_v61, %v648_v46  ;;  %v2890_v9 = vld [vmem:[#allocation2 + $0x1f8] sm:$0xff] }
  0x3c   :  { %v1015_v56 = vadd.f32 %v951_v25, %v883_v36  ;;  %v1262_v24 = vmul.f32 %v2846_v48, %v1222_v44  ;;  %v1394_v32 = vmul.f32 %v2851_v49, %v1223_v42  ;;  %v1017_v47 = vadd.f32 %v953_v28, %v885_v40 }
  0x3d   :  { %v1264_v59 = vmul.f32 %v2846_v48, %v1223_v42  ;;  %v1266_v60 = vmul.f32 %v2846_v48, %v1224_v31  ;;  %v202_v46 = vmul.f32 %v2739_v29, %v2853_v51  ;;  %v2881_v0 = vmul.f32 %v2851_v49, %v1224_v31 }
  0x3e   :  { %v1326_v58 = vadd.f32 %v1262_v24, %v1013_v54  ;;  %v1526_v4 = vmul.f32 %v2855_v52, %v1224_v31  ;;  %v204_v6 = vmul.f32 %v2739_v29, %v2872_v43  ;;  %v203_v10 = vmul.f32 %v2739_v29, %v2870_v57 }
  0x3f   :  { %v205_v11 = vmul.f32 %v2739_v29, %v2876_v63  ;;  %v206_v14 = vmul.f32 %v2739_v29, %v2884_v5  ;;  %v270_v16 = vmul.f32 %v2742_v30, %v2872_v43  ;;  %v271_v23 = vmul.f32 %v2742_v30, %v2876_v63 }
  0x40   :  { %v1458_v20 = vadd.f32 %v1394_v32, %v1326_v58  ;;  %v272_v25 = vmul.f32 %v2742_v30, %v2884_v5  ;;  %v273_v28 = vmul.f32 %v2742_v30, %v2888_v7  ;;  %v2908_v39 = vadd.f32 %v1264_v59, %v1015_v56 }
  0x41   :  { %v274_v36 = vmul.f32 %v2742_v30, %v2890_v9  ;;  %v334_v40 = vadd.f32 %v270_v16, %v202_v46  ;;  %v402_v44 = vmul.f32 %v2749_v34, %v2884_v5  ;;  %v2914_v42 = vadd.f32 %v1266_v60, %v1017_v47 }
  0x42   :  { %v1590_v54 = vadd.f32 %v1526_v4, %v1458_v20  ;;  %v336_v31 = vadd.f32 %v272_v25, %v204_v6  ;;  %v404_v24 = vmul.f32 %v2749_v34, %v2890_v9  ;;  %v2918_v32 = vadd.f32 %v271_v23, %v203_v10  ;;  %v2929_v6 = vld [vmem:[#allocation2 + $0x200] sm:$0xff]  ;;  %v2931_v10 = vld [vmem:[#allocation2 + $0x218] sm:$0xff] }
  0x43   :  { %v338_v58 = vadd.f32 %v274_v36, %v206_v14  ;;  %v406_v56 = vmul.f32 %v2749_v34, %v2900_v21  ;;  %v516_v59 = vrot.slane %v2853_v51, 1  ;;  %v2924_v46 = vadd.f32 %v273_v28, %v205_v11 }
  0x44   :  { %2460 = vmatprep.mubr.msk.f32.mxu0 %vm1658_vm2, %v1590_v54  ;;  %v517_v47 = vrot.slane %v2872_v43, 1  ;;  %v518_v60 = vrot.slane %v2884_v5, 1  ;;  %v519_v4 = vrot.slane %v2890_v9, 1  ;;  %v466_v14 = vadd.f32 %v402_v44, %v334_v40 }
  0x45   :  { %v520_v16 = vrot.slane %v2900_v21, 1  ;;  %v5028_v20 = vrot.slane %v2870_v57, 1  ;;  %v5026_v23 = vrot.slane %v2876_v63, 1  ;;  %v468_v25 = vadd.f32 %v404_v24, %v336_v31 }
  0x46   :  { %v5025_v11 = vrot.slane %v2888_v7, 1  ;;  %v5024_v28 = vrot.slane %v2929_v6, 1  ;;  %v5027_v36 = vrot.slane %v2931_v10, 1  ;;  %v470_v54 = vadd.f32 %v406_v56, %v338_v58 }
  0x47   :  { %v663_v45 = vsel %vm608_vm0, %v516_v59, %v5028_v20  ;;  %v664_v40 = vsel %vm608_vm0, %v517_v47, %v5026_v23  ;;  %v1095_v44 = vrot.slane %v2853_v51, 2  ;;  %v1096_v56 = vrot.slane %v2872_v43, 2 }
  0x48   :  { %v665_v31 = vsel %vm608_vm0, %v518_v60, %v5025_v11  ;;  %v2956_v24 = vsel %vm608_vm0, %v519_v4, %v5024_v28  ;;  %v717_v58 = vmul.f32 %v2806_v61, %v663_v45  ;;  %v2964_v51 = vsel %vm608_vm0, %v520_v16, %v5027_v36  ;;  %v58_v36 = vld [vmem:[#allocation2 + $0x10] sm:$0xff] }
  0x49   :  { %v719_v59 = vmul.f32 %v2806_v61, %v664_v40  ;;  %v721_v47 = vmul.f32 %v2806_v61, %v665_v31  ;;  %v1097_v60 = vrot.slane %v2884_v5, 2  ;;  %v849_v4 = vmul.f32 %v2809_v62, %v664_v40 }
  0x4a   :  { %v781_v27 = vadd.f32 %v717_v58, %v466_v14  ;;  %v851_v28 = vmul.f32 %v2809_v62, %v665_v31  ;;  %v853_v45 = vmul.f32 %v2809_v62, %v2956_v24  ;;  %v981_v23 = vmul.f32 %v2818_v3, %v665_v31 }
  0x4b   :  { %v783_v43 = vadd.f32 %v719_v59, %v468_v25  ;;  %v785_v11 = vadd.f32 %v721_v47, %v470_v54  ;;  %v983_v16 = vmul.f32 %v2818_v3, %v2956_v24  ;;  %v985_v5 = vmul.f32 %v2818_v3, %v2964_v51  ;;  %v61_v59 = vld [vmem:[#allocation2 + $0x28] sm:$0xff] }
  0x4c   :  { %v913_v20 = vadd.f32 %v849_v4, %v781_v27  ;;  %v5033_v14 = vrot.slane %v2870_v57, 2  ;;  %v5031_v40 = vrot.slane %v2876_v63, 2  ;;  %v5032_v35 = vrot.slane %v2888_v7, 2 }
  0x4d   :  { %v915_v58 = vadd.f32 %v851_v28, %v783_v43  ;;  %v917_v41 = vadd.f32 %v853_v45, %v785_v11  ;;  %v371_v25 = vmul.f32 %v2749_v34, %v2723_v17  ;;  %v570_v47 = vrot.slane %v58_v36, 1 }
  0x4e   :  { %v1045_v54 = vadd.f32 %v981_v23, %v913_v20  ;;  %v1240_v27 = vsel %vm1185_vm1, %v1095_v44, %v5033_v14  ;;  %v1241_v31 = vsel %vm1185_vm1, %v1096_v56, %v5031_v40  ;;  %v1242_v4 = vsel %vm1185_vm1, %v1097_v60, %v5032_v35  ;;  %v64_v23 = vld [vmem:[#allocation2 + $0x40] sm:$0xff] }
  0x4f   :  { %v1047_v28 = vadd.f32 %v983_v16, %v915_v58  ;;  %v1049_v11 = vadd.f32 %v985_v5, %v917_v41  ;;  %v1294_v20 = vmul.f32 %v2846_v48, %v1240_v27  ;;  %v1296_v45 = vmul.f32 %v2846_v48, %v1241_v31 }
  0x50   :  { %v1298_v44 = vmul.f32 %v2846_v48, %v1242_v4  ;;  %v1426_v43 = vmul.f32 %v2851_v49, %v1241_v31  ;;  %v3000_v56 = vmul.f32 %v2851_v49, %v1242_v4  ;;  %v1558_v41 = vmul.f32 %v2855_v52, %v1242_v4 }
  0x51   :  { %v1358_v40 = vadd.f32 %v1294_v20, %v1045_v54  ;;  %v435_v16 = vadd.f32 %v371_v25, %v2857_v37  ;;  %v571_v5 = vrot.slane %v61_v59, 1  ;;  %v1360_v58 = vadd.f32 %v1296_v45, %v1047_v28  ;;  %v118_v20 = vld [vmem:[#allocation2 + $0x1f0] sm:$0xff] }
  0x52   :  { %v3004_v60 = vadd.f32 %v1298_v44, %v1049_v11  ;;  %v572_v27 = vrot.slane %v64_v23, 1  ;;  %v609_v35 = vsel %vm608_vm0, %v534_v15, %v570_v47  ;;  %v1149_v37 = vrot.slane %v58_v36, 2  ;;  %v112_v47 = vld [vmem:[#allocation2 + $0x1c0] sm:$0xff]  ;;  %v115_v36 = vld [vmem:[#allocation2 + $0x1d8] sm:$0xff] }
  0x53   :  { %v1490_v14 = vadd.f32 %v1426_v43, %v1358_v40  ;;  %v3014_v54 = vsel %vm608_vm0, %v535_v22, %v571_v5  ;;  %v686_v31 = vmul.f32 %v2806_v61, %v609_v35  ;;  %v1150_v15 = vrot.slane %v61_v59, 2 }
  0x54   :  { %v3021_v25 = vsel %vm608_vm0, %v536_v26, %v572_v27  ;;  %v818_v28 = vmul.f32 %v2809_v62, %v3014_v54  ;;  %v1151_v40 = vrot.slane %v64_v23, 2  ;;  %v1186_v35 = vsel %vm1185_vm1, %v1113_v13, %v1149_v37 }
  0x55   :  { %v1622_v11 = vadd.f32 %v1558_v41, %v1490_v14  ;;  %v750_v4 = vadd.f32 %v686_v31, %v435_v16  ;;  %v950_v22 = vmul.f32 %v2818_v3, %v3021_v25  ;;  %v5040_v26 = vrot.slane %v2716_v12, 2 }
  0x56   :  { %v5041_v59 = vrot.slane %v2723_v17, 2  ;;  %v1263_v23 = vmul.f32 %v2846_v48, %v1186_v35  ;;  %v403_v8 = vmul.f32 %v2749_v34, %v2888_v7  ;;  %v588_v43 = vrot.slane %v112_v47, 1 }
  0x57   :  { %v1187_v45 = vsel %vm1185_vm1, %v5040_v26, %v1150_v15  ;;  %2508 = vmatprep.mubr.msk.f32.mxu1 %vm1658_vm2, %v1622_v11  ;;  %v882_v13 = vadd.f32 %v818_v28, %v750_v4  ;;  %v589_v41 = vrot.slane %v115_v36, 1  ;;  %v590_v16 = vrot.slane %v118_v20, 1 }
  0x58   :  { %v3039_v14 = vsel %vm1185_vm1, %v5041_v59, %v1151_v40  ;;  %v1395_v44 = vmul.f32 %v2851_v49, %v1187_v45  ;;  %v467_v17 = vadd.f32 %v403_v8, %v2918_v32  ;;  %v1167_v5 = vrot.slane %v112_v47, 2 }
  0x59   :  { %v1527_v12 = vmul.f32 %v2855_v52, %v3039_v14  ;;  %v1014_v27 = vadd.f32 %v950_v22, %v882_v13  ;;  %v5042_v31 = vrot.slane %v2870_v57, 1  ;;  %v1168_v15 = vrot.slane %v115_v36, 2 }
  0x5a   :  { %v1169_v40 = vrot.slane %v118_v20, 2  ;;  %v5043_v28 = vrot.slane %v2876_v63, 1  ;;  %v5044_v4 = vrot.slane %v2888_v7, 1  ;;  %v5045_v22 = vrot.slane %v2870_v57, 2 }
  0x5b   :  { %v627_v37 = vsel %vm608_vm0, %v5042_v31, %v588_v43  ;;  %v1327_v36 = vadd.f32 %v1263_v23, %v1014_v27  ;;  %v5046_v59 = vrot.slane %v2876_v63, 2  ;;  %v5047_v43 = vrot.slane %v2888_v7, 2  ;;  %v67_v31 = vld [vmem:[#allocation2 + $0x58] sm:$0xff] }
  0x5c   :  { %v628_v11 = vsel %vm608_vm0, %v5043_v28, %v589_v41  ;;  %v3061_v32 = vsel %vm608_vm0, %v5044_v4, %v590_v16  ;;  %v718_v47 = vmul.f32 %v2806_v61, %v627_v37  ;;  %v1204_v35 = vsel %vm1185_vm1, %v5045_v22, %v1167_v5 }
  0x5d   :  { %v850_v20 = vmul.f32 %v2809_v62, %v628_v11  ;;  %v982_v26 = vmul.f32 %v2818_v3, %v3061_v32  ;;  %v1205_v8 = vsel %vm1185_vm1, %v5046_v59, %v1168_v15  ;;  %v3079_v57 = vsel %vm1185_vm1, %v5047_v43, %v1169_v40 }
  0x5e   :  { %v782_v13 = vadd.f32 %v718_v47, %v467_v17  ;;  %v1295_v41 = vmul.f32 %v2846_v48, %v1204_v35  ;;  %v1427_v23 = vmul.f32 %v2851_v49, %v1205_v8  ;;  %v1459_v16 = vadd.f32 %v1395_v44, %v1327_v36 }
  0x5f   :  { %v1559_v5 = vmul.f32 %v2855_v52, %v3079_v57  ;;  %v1080_v63 = vrot.slane %v2725_v18, 2  ;;  %v1116_v27 = vrot.slane %v2727_v19, 2  ;;  %v1460_v37 = vadd.f32 %v2881_v0, %v2908_v39 }
  0x60   :  { %v914_v17 = vadd.f32 %v850_v20, %v782_v13  ;;  %v1098_v15 = vrot.slane %v2890_v9, 2  ;;  %v1134_v40 = vrot.slane %v2929_v6, 2  ;;  %v1591_v28 = vadd.f32 %v1527_v12, %v1459_v16  ;;  %v121_v16 = vld [vmem:[#allocation2 + $0x208] sm:$0xff] }
  0x61   :  { %v3093_v44 = vsel %vm1185_vm1, %v1080_v63, %v1116_v27  ;;  %v1492_v4 = vadd.f32 %v3000_v56, %v1360_v58  ;;  %v373_v47 = vmul.f32 %v2749_v34, %v2727_v19  ;;  %v573_v39 = vrot.slane %v67_v31, 1 }
  0x62   :  { %v1046_v22 = vadd.f32 %v982_v26, %v914_v17  ;;  %v1528_v35 = vmul.f32 %v2855_v52, %v3093_v44  ;;  %v3102_v0 = vsel %vm1185_vm1, %v1098_v15, %v1134_v40  ;;  %2461 = vmatmul.mubr.msk.f32.vlgmr.msra.gmra.mxu0 %vm1658_vm2, %v1591_v28  ;;  %v688_v56 = vmul.f32 %v2806_v61, %v3014_v54 }
  0x63   :  { %v1560_v12 = vmul.f32 %v2855_v52, %v3102_v0  ;;  %v437_v36 = vadd.f32 %v373_v47, %v2859_v53  ;;  %v820_v58 = vmul.f32 %v2809_v62, %v3021_v25  ;;  %v5048_v59 = vrot.slane %v2727_v19, 1 }
  0x64   :  { %v1359_v20 = vadd.f32 %v1295_v41, %v1046_v22  ;;  %v1592_v26 = vadd.f32 %v1528_v35, %v1460_v37  ;;  %v1152_v43 = vrot.slane %v67_v31, 2  ;;  %v1265_v54 = vmul.f32 %v2846_v48, %v1187_v45 }
  0x65   :  { %v3116_v13 = vsel %vm608_vm0, %v5048_v59, %v573_v39  ;;  %v1624_v63 = vadd.f32 %v1560_v12, %v1492_v4  ;;  %v752_v17 = vadd.f32 %v688_v56, %v437_v36  ;;  %v1397_v37 = vmul.f32 %v2851_v49, %v3039_v14 }
  0x66   :  { %v952_v53 = vmul.f32 %v2818_v3, %v3116_v13  ;;  %v1491_v15 = vadd.f32 %v1427_v23, %v1359_v20  ;;  %2463 = vmatprep.mubr.msk.f32.mxu0 %vm1658_vm2, %v1592_v26  ;;  %v3124_v41 = vsel %vm1185_vm1, %v1116_v27, %v1152_v43  ;;  %v405_v31 = vmul.f32 %v2749_v34, %v2929_v6 }
  0x67   :  { %v884_v28 = vadd.f32 %v820_v58, %v752_v17  ;;  %v1529_v4 = vmul.f32 %v2855_v52, %v3124_v41  ;;  %v591_v47 = vrot.slane %v121_v16, 1  ;;  %v720_v45 = vmul.f32 %v2806_v61, %v628_v11 }
  0x68   :  { %v1623_v23 = vadd.f32 %v1559_v5, %v1491_v15  ;;  %v469_v22 = vadd.f32 %v405_v31, %v2924_v46  ;;  %v852_v27 = vmul.f32 %v2809_v62, %v3061_v32  ;;  %v1170_v35 = vrot.slane %v121_v16, 2  ;;  %v70_v31 = vld [vmem:[#allocation2 + $0x70] sm:$0xff] }
  0x69   :  { %v1016_v39 = vadd.f32 %v952_v53, %v884_v28  ;;  %v5049_v12 = vrot.slane %v2929_v6, 1  ;;  %v1297_v56 = vmul.f32 %v2846_v48, %v1205_v8  ;;  %v1429_v58 = vmul.f32 %v2851_v49, %v3079_v57 }
  0x6a   :  { %2509 = vmatmul.mubr.msk.f32.vlgmr.msra.gmra.mxu1 %vm1658_vm2, %v1623_v23  ;;  %v784_v11 = vadd.f32 %v720_v45, %v469_v22  ;;  %v3150_v5 = vsel %vm1185_vm1, %v1134_v40, %v1170_v35  ;;  %v1081_v20 = vrot.slane %v2746_v33, 2  ;;  %v1117_v59 = vrot.slane %v2760_v38, 2 }
  0x6b   :  { %v3140_v36 = vsel %vm608_vm0, %v5049_v12, %v591_v47  ;;  %2511 = vmatprep.mubr.msk.f32.mxu1 %vm1658_vm2, %v1624_v63  ;;  %v1329_v26 = vadd.f32 %v1265_v54, %v1016_v39  ;;  %v1561_v8 = vmul.f32 %v2855_v52, %v3150_v5  ;;  %v1398_v43 = vmul.f32 %v2851_v49, %v3093_v44 }
  0x6c   :  { %v984_v46 = vmul.f32 %v2818_v3, %v3140_v36  ;;  %v916_v16 = vadd.f32 %v852_v27, %v784_v11  ;;  %v1099_v17 = vrot.slane %v2900_v21, 2  ;;  %v1135_v53 = vrot.slane %v2931_v10, 2 }
  0x6d   :  { %v1430_v40 = vmul.f32 %v2851_v49, %v3102_v0  ;;  %v1461_v15 = vadd.f32 %v1397_v37, %v1329_v26  ;;  %v3165_v63 = vsel %vm1185_vm1, %v1081_v20, %v1117_v59  ;;  %v1462_v54 = vadd.f32 %v1398_v43, %v2914_v42 }
  0x6e   :  { %v243_v28 = vmul.f32 %v2742_v30, %v2727_v19  ;;  %v1048_v47 = vadd.f32 %v984_v46, %v916_v16  ;;  %v1530_v45 = vmul.f32 %v2855_v52, %v3165_v63  ;;  %v3174_v23 = vsel %vm1185_vm1, %v1099_v17, %v1135_v53 }
  0x6f   :  { %v1494_v37 = vadd.f32 %v1430_v40, %v3004_v60  ;;  %v1593_v22 = vadd.f32 %v1529_v4, %v1461_v15  ;;  %v1562_v27 = vmul.f32 %v2855_v52, %v3174_v23  ;;  %v375_v35 = vmul.f32 %v2749_v34, %v2760_v38 }
  0x70   :  { %v307_v42 = vadd.f32 %v243_v28, %v2798_v55  ;;  %v1361_v39 = vadd.f32 %v1297_v56, %v1048_v47  ;;  %v1594_v12 = vadd.f32 %v1530_v45, %v1462_v54  ;;  %v574_v11 = vrot.slane %v70_v31, 1  ;;  %v124_v55 = vld [vmem:[#allocation2 + $0x220] sm:$0xff] }
  0x71   :  { %v690_v46 = vmul.f32 %v2806_v61, %v3021_v25  ;;  %v207_v20 = vmul.f32 %v2739_v29, %v2888_v7  ;;  %2464 = vmatmul.mubr.msk.f32.gmra.mxu0 %vm1658_vm2, %v1593_v22  ;;  %v822_v4 = vmul.f32 %v2809_v62, %v3116_v13  ;;  %v1153_v26 = vrot.slane %v70_v31, 2 }
  0x72   :  { %v439_v60 = vadd.f32 %v375_v35, %v307_v42  ;;  %v3191_v43 = vmul.f32 %v2806_v61, %v2815_v2  ;;  %v1493_v56 = vadd.f32 %v1429_v58, %v1361_v39  ;;  %2466 = vmatprep.mubr.msk.f32.mxu0 %vm1658_vm2, %v1594_v12  ;;  %v1626_v16 = vadd.f32 %v1562_v27, %v1494_v37  ;;  %v3218_v27 = vld [vmem:[#allocation2 + $0x78] sm:$0xff] }
  0x73   :  { %v5050_v25 = vrot.slane %v2760_v38, 1  ;;  %v3204_v15 = vsel %vm1185_vm1, %v1117_v59, %v1153_v26  ;;  %v275_v58 = vmul.f32 %v2742_v30, %v2929_v6  ;;  %v3210_v54 = vmul.f32 %v2806_v61, %v2956_v24 }
  0x74   :  { %v754_v17 = vadd.f32 %v690_v46, %v439_v60  ;;  %v1625_v31 = vadd.f32 %v1561_v8, %v1493_v56  ;;  %v407_v28 = vmul.f32 %v2749_v34, %v2931_v10  ;;  %v592_v47 = vrot.slane %v124_v55, 1 }
  0x75   :  { %v3198_v7 = vsel %vm608_vm0, %v5050_v25, %v574_v11  ;;  %v1267_v37 = vmul.f32 %v2846_v48, %v3039_v14  ;;  %v339_v22 = vadd.f32 %v275_v58, %v207_v20  ;;  %v722_v59 = vmul.f32 %v2806_v61, %v3061_v32  ;;  %v3238_v20 = vld [vmem:[#allocation2 + $0x80] sm:$0xff] }
  0x76   :  { %v954_v40 = vmul.f32 %v2818_v3, %v3198_v7  ;;  %v886_v45 = vadd.f32 %v822_v4, %v754_v17  ;;  %2512 = vmatmul.mubr.msk.f32.gmra.mxu1 %vm1658_vm2, %v1625_v31  ;;  %v1399_v24 = vmul.f32 %v2851_v49, %v3124_v41  ;;  %v1531_v8 = vmul.f32 %v2855_v52, %v3204_v15 }
  0x77   :  { %v5051_v42 = vrot.slane %v2931_v10, 1  ;;  %v1171_v14 = vrot.slane %v124_v55, 2  ;;  %2514 = vmatprep.mubr.msk.f32.mxu1 %vm1658_vm2, %v1626_v16  ;;  %v471_v39 = vadd.f32 %v407_v28, %v339_v22  ;;  %v854_v12 = vmul.f32 %v2809_v62, %v3140_v36 }
  0x78   :  { %v1018_v32 = vadd.f32 %v954_v40, %v886_v45  ;;  %v176_v11 = vmul.f32 %v2739_v29, %v2725_v18  ;;  %v244_v60 = vmul.f32 %v2742_v30, %v2746_v33  ;;  %v376_v4 = vmul.f32 %v2749_v34, %v3218_v27  ;;  %v3262_v45 = vld [vmem:[#allocation2 + $0x228] sm:$0xff] }
  0x79   :  { %v3229_v35 = vsel %vm608_vm0, %v5051_v42, %v592_v47  ;;  %v503_v26 = vrot.slane %v3218_v27, 1  ;;  %v786_v56 = vadd.f32 %v722_v59, %v471_v39  ;;  %v3247_v16 = vsel %vm1185_vm1, %v1135_v53, %v1171_v14 }
  0x7a   :  { %v986_v46 = vmul.f32 %v2818_v3, %v3229_v35  ;;  %v1331_v55 = vadd.f32 %v1267_v37, %v1018_v32  ;;  %v539_v18 = vrot.slane %v3238_v20, 1  ;;  %v3252_v25 = vmul.f32 %v2806_v61, %v2964_v51 }
  0x7b   :  { %v1299_v17 = vmul.f32 %v2846_v48, %v3079_v57  ;;  %v308_v40 = vadd.f32 %v244_v60, %v176_v11  ;;  %v1082_v58 = vrot.slane %v3218_v27, 2  ;;  %v918_v28 = vadd.f32 %v854_v12, %v786_v56  ;;  %v3275_v12 = vld [vmem:[#allocation2 + $0x230] sm:$0xff] }
  0x7c   :  { %v1463_v31 = vadd.f32 %v1399_v24, %v1331_v55  ;;  %v3259_v47 = vsel %vm608_vm0, %v503_v26, %v539_v18  ;;  %v1118_v53 = vrot.slane %v3238_v20, 2  ;;  %v1431_v37 = vmul.f32 %v2851_v49, %v3150_v5 }
  0x7d   :  { %v1563_v22 = vmul.f32 %v2855_v52, %v3247_v16  ;;  %v440_v57 = vadd.f32 %v376_v4, %v308_v40  ;;  %v823_v59 = vmul.f32 %v2809_v62, %v2815_v2  ;;  %v1050_v42 = vadd.f32 %v986_v46, %v918_v28 }
  0x7e   :  { %v1595_v24 = vadd.f32 %v1531_v8, %v1463_v31  ;;  %v955_v14 = vmul.f32 %v2818_v3, %v3259_v47  ;;  %v208_v32 = vmul.f32 %v2739_v29, %v2890_v9  ;;  %v276_v11 = vmul.f32 %v2742_v30, %v2900_v21 }
  0x7f   :  { %v755_v39 = vadd.f32 %v2866_v50, %v440_v57  ;;  %v408_v60 = vmul.f32 %v2749_v34, %v3262_v45  ;;  %v521_v2 = vrot.slane %v3262_v45, 1  ;;  %v1363_v8 = vadd.f32 %v1299_v17, %v1050_v42 }
  0x80   :  { %2467 = vmatmul.mubr.msk.f32.gmra.mxu0 %vm1658_vm2, %v1595_v24  ;;  %v3285_v46 = vsel %vm1185_vm1, %v1082_v58, %v1118_v53  ;;  %v1268_v50 = vmul.f32 %v2846_v48, %v3093_v44  ;;  %v557_v9 = vrot.slane %v3275_v12, 1  ;;  %v340_v26 = vadd.f32 %v276_v11, %v208_v32  ;;  %v73_v58 = vld [vmem:[#allocation2 + $0x88] sm:$0xff] }
  0x81   :  { %v887_v4 = vadd.f32 %v823_v59, %v755_v39  ;;  %v1100_v55 = vrot.slane %v3262_v45, 2  ;;  %v1136_v56 = vrot.slane %v3275_v12, 2  ;;  %v1495_v40 = vadd.f32 %v1431_v37, %v1363_v8 }
  0x82   :  { %v1400_v31 = vmul.f32 %v2851_v49, %v3165_v63  ;;  %v3296_v17 = vsel %vm608_vm0, %v521_v2, %v557_v9  ;;  %v177_v44 = vmul.f32 %v2739_v29, %v2727_v19  ;;  %v1532_v57 = vmul.f32 %v2855_v52, %v3285_v46 }
  0x83   :  { %v1019_v28 = vadd.f32 %v955_v14, %v887_v4  ;;  %v472_v59 = vadd.f32 %v408_v60, %v340_v26  ;;  %v855_v24 = vmul.f32 %v2809_v62, %v2964_v51  ;;  %v1627_v37 = vadd.f32 %v1563_v22, %v1495_v40 }
  0x84   :  { %v987_v42 = vmul.f32 %v2818_v3, %v3296_v17  ;;  %v245_v32 = vmul.f32 %v2742_v30, %v2760_v38  ;;  %v377_v39 = vmul.f32 %v2749_v34, %v3238_v20  ;;  %v3315_v14 = vsel %vm1185_vm1, %v1100_v55, %v1136_v56  ;;  %v127_v55 = vld [vmem:[#allocation2 + $0x238] sm:$0xff] }
  0x85   :  { %v1332_v11 = vadd.f32 %v1268_v50, %v1019_v28  ;;  %v787_v19 = vadd.f32 %v3210_v54, %v472_v59  ;;  %v575_v51 = vrot.slane %v73_v58, 1  ;;  %2515 = vmatmul.mubr.msk.f32.gmra.mxu1 %vm1658_vm2, %v1627_v37  ;;  %v1300_v22 = vmul.f32 %v2846_v48, %v3102_v0 }
  0x86   :  { %v309_v60 = vadd.f32 %v245_v32, %v177_v44  ;;  %v692_v2 = vmul.f32 %v2806_v61, %v3116_v13  ;;  %v1154_v8 = vrot.slane %v73_v58, 2  ;;  %v1432_v54 = vmul.f32 %v2851_v49, %v3174_v23 }
  0x87   :  { %v1464_v50 = vadd.f32 %v1400_v31, %v1332_v11  ;;  %v919_v4 = vadd.f32 %v855_v24, %v787_v19  ;;  %v3326_v26 = vsel %vm608_vm0, %v539_v18, %v575_v51  ;;  %v1564_v40 = vmul.f32 %v2855_v52, %v3315_v14 }
  0x88   :  { %v441_v28 = vadd.f32 %v377_v39, %v309_v60  ;;  %v824_v0 = vmul.f32 %v2809_v62, %v3198_v7  ;;  %v209_v13 = vmul.f32 %v2739_v29, %v2929_v6  ;;  %v956_v44 = vmul.f32 %v2818_v3, %v3326_v26  ;;  %v3355_v60 = vld [vmem:[#allocation2 + $0x90] sm:$0xff] }
  0x89   :  { %v1596_v31 = vadd.f32 %v1532_v57, %v1464_v50  ;;  %v1051_v58 = vadd.f32 %v987_v42, %v919_v4  ;;  %v277_v18 = vmul.f32 %v2742_v30, %v2931_v10  ;;  %v3340_v24 = vsel %vm1185_vm1, %v1118_v53, %v1154_v8 }
  0x8a   :  { %v756_v59 = vadd.f32 %v692_v2, %v441_v28  ;;  %v409_v37 = vmul.f32 %v2749_v34, %v3275_v12  ;;  %v593_v32 = vrot.slane %v127_v55, 1  ;;  %v1269_v57 = vmul.f32 %v2846_v48, %v3124_v41 }
  0x8b   :  { %2469 = vmatprep.mubr.msk.f32.mxu0 %vm1658_vm2, %v1596_v31  ;;  %v1364_v6 = vadd.f32 %v1300_v22, %v1051_v58  ;;  %v341_v42 = vadd.f32 %v277_v18, %v209_v13  ;;  %v724_v39 = vmul.f32 %v2806_v61, %v3140_v36  ;;  %v1401_v19 = vmul.f32 %v2851_v49, %v3204_v15 }
  0x8c   :  { %v888_v11 = vadd.f32 %v824_v0, %v756_v59  ;;  %v3353_v53 = vsel %vm608_vm0, %v557_v9, %v593_v32  ;;  %v1172_v51 = vrot.slane %v127_v55, 2  ;;  %v1533_v22 = vmul.f32 %v2855_v52, %v3340_v24 }
  0x8d   :  { %v1496_v2 = vadd.f32 %v1432_v54, %v1364_v6  ;;  %v473_v41 = vadd.f32 %v409_v37, %v341_v42  ;;  %v856_v8 = vmul.f32 %v2809_v62, %v3229_v35  ;;  %v988_v50 = vmul.f32 %v2818_v3, %v3353_v53  ;;  %v3367_v54 = vld [vmem:[#allocation2 + $0x98] sm:$0xff]  ;;  %v3390_v42 = vld [vmem:[#allocation2 + $0x240] sm:$0xff] }
  0x8e   :  { %v1020_v36 = vadd.f32 %v956_v44, %v888_v11  ;;  %v178_v4 = vmul.f32 %v2739_v29, %v2746_v33  ;;  %v246_v9 = vmul.f32 %v2742_v30, %v3218_v27  ;;  %v378_v0 = vmul.f32 %v2749_v34, %v3355_v60 }
  0x8f   :  { %v1628_v55 = vadd.f32 %v1564_v40, %v1496_v2  ;;  %v788_v28 = vadd.f32 %v724_v39, %v473_v41  ;;  %v504_v13 = vrot.slane %v3355_v60, 1  ;;  %v3376_v58 = vsel %vm1185_vm1, %v1136_v56, %v1172_v51 }
  0x90   :  { %v1333_v31 = vadd.f32 %v1269_v57, %v1020_v36  ;;  %v310_v33 = vadd.f32 %v246_v9, %v178_v4  ;;  %v540_v44 = vrot.slane %v3367_v54, 1  ;;  %v1301_v18 = vmul.f32 %v2846_v48, %v3150_v5 }
  0x91   :  { %2517 = vmatprep.mubr.msk.f32.mxu1 %vm1658_vm2, %v1628_v55  ;;  %v920_v40 = vadd.f32 %v856_v8, %v788_v28  ;;  %v825_v59 = vmul.f32 %v2809_v62, %v3259_v47  ;;  %v1083_v37 = vrot.slane %v3355_v60, 2  ;;  %v1119_v57 = vrot.slane %v3367_v54, 2  ;;  %v3401_v8 = vld [vmem:[#allocation2 + $0x248] sm:$0xff] }
  0x92   :  { %v1465_v32 = vadd.f32 %v1401_v19, %v1333_v31  ;;  %v442_v6 = vadd.f32 %v378_v0, %v310_v33  ;;  %v3387_v56 = vsel %vm608_vm0, %v504_v13, %v540_v44  ;;  %v1433_v11 = vmul.f32 %v2851_v49, %v3247_v16 }
  0x93   :  { %v1052_v39 = vadd.f32 %v988_v50, %v920_v40  ;;  %v1565_v5 = vmul.f32 %v2855_v52, %v3376_v58  ;;  %v210_v51 = vmul.f32 %v2739_v29, %v2900_v21  ;;  %v957_v41 = vmul.f32 %v2818_v3, %v3387_v56 }
  0x94   :  { %v1597_v19 = vadd.f32 %v1533_v22, %v1465_v32  ;;  %v757_v2 = vadd.f32 %v3191_v43, %v442_v6  ;;  %v278_v36 = vmul.f32 %v2742_v30, %v3262_v45  ;;  %v410_v4 = vmul.f32 %v2749_v34, %v3390_v42  ;;  %v76_v32 = vld [vmem:[#allocation2 + $0xa0] sm:$0xff] }
  0x95   :  { %v1365_v50 = vadd.f32 %v1301_v18, %v1052_v39  ;;  %v522_v9 = vrot.slane %v3390_v42, 1  ;;  %v558_v55 = vrot.slane %v3401_v8, 1  ;;  %v3412_v43 = vsel %vm1185_vm1, %v1083_v37, %v1119_v57 }
  0x96   :  { %2470 = vmatmul.mubr.msk.f32.gmra.mxu0 %vm1658_vm2, %v1597_v19  ;;  %v889_v21 = vadd.f32 %v825_v59, %v757_v2  ;;  %v1270_v22 = vmul.f32 %v2846_v48, %v3165_v63  ;;  %v342_v28 = vadd.f32 %v278_v36, %v210_v51  ;;  %v1101_v31 = vrot.slane %v3390_v42, 2 }
  0x97   :  { %v1497_v0 = vadd.f32 %v1433_v11, %v1365_v50  ;;  %v3418_v13 = vsel %vm608_vm0, %v522_v9, %v558_v55  ;;  %v1137_v33 = vrot.slane %v3401_v8, 2  ;;  %v1402_v18 = vmul.f32 %v2851_v49, %v3285_v46 }
  0x98   :  { %v1021_v40 = vadd.f32 %v957_v41, %v889_v21  ;;  %v474_v59 = vadd.f32 %v410_v4, %v342_v28  ;;  %v857_v37 = vmul.f32 %v2809_v62, %v3296_v17  ;;  %v1534_v6 = vmul.f32 %v2855_v52, %v3412_v43 }
  0x99   :  { %v1629_v63 = vadd.f32 %v1565_v5, %v1497_v0  ;;  %v179_v39 = vmul.f32 %v2739_v29, %v2760_v38  ;;  %v247_v11 = vmul.f32 %v2742_v30, %v3238_v20  ;;  %v989_v2 = vmul.f32 %v2818_v3, %v3418_v13 }
  0x9a   :  { %v1334_v51 = vadd.f32 %v1270_v22, %v1021_v40  ;;  %v789_v19 = vadd.f32 %v3252_v25, %v474_v59  ;;  %v379_v41 = vmul.f32 %v2749_v34, %v3367_v54  ;;  %v3442_v5 = vsel %vm1185_vm1, %v1101_v31, %v1137_v33  ;;  %v130_v31 = vld [vmem:[#allocation2 + $0x250] sm:$0xff] }
  0x9b   :  { %2518 = vmatmul.mubr.msk.f32.gmra.mxu1 %vm1658_vm2, %v1629_v63  ;;  %v311_v38 = vadd.f32 %v247_v11, %v179_v39  ;;  %v576_v36 = vrot.slane %v76_v32, 1  ;;  %v694_v50 = vmul.f32 %v2806_v61, %v3198_v7  ;;  %v1302_v9 = vmul.f32 %v2846_v48, %v3174_v23 }
  0x9c   :  { %v1466_v25 = vadd.f32 %v1402_v18, %v1334_v51  ;;  %v921_v4 = vadd.f32 %v857_v37, %v789_v19  ;;  %v1155_v21 = vrot.slane %v76_v32, 2  ;;  %v826_v0 = vmul.f32 %v2809_v62, %v3326_v26 }
  0x9d   :  { %v443_v22 = vadd.f32 %v379_v41, %v311_v38  ;;  %v3450_v28 = vsel %vm608_vm0, %v540_v44, %v576_v36  ;;  %v211_v40 = vmul.f32 %v2739_v29, %v2931_v10  ;;  %v1434_v18 = vmul.f32 %v2851_v49, %v3315_v14  ;;  %v3477_v38 = vld [vmem:[#allocation2 + $0xa8] sm:$0xff] }
  0x9e   :  { %v1598_v59 = vadd.f32 %v1534_v6, %v1466_v25  ;;  %v1053_v7 = vadd.f32 %v989_v2, %v921_v4  ;;  %v1566_v23 = vmul.f32 %v2855_v52, %v3442_v5  ;;  %v958_v44 = vmul.f32 %v2818_v3, %v3450_v28 }
  0x9f   :  { %v758_v37 = vadd.f32 %v694_v50, %v443_v22  ;;  %v279_v32 = vmul.f32 %v2742_v30, %v3275_v12  ;;  %v411_v63 = vmul.f32 %v2749_v34, %v3401_v8  ;;  %v3469_v6 = vsel %vm1185_vm1, %v1119_v57, %v1155_v21 }
  0xa0   :  { %2472 = vmatprep.mubr.msk.f32.mxu0 %vm1658_vm2, %v1598_v59  ;;  %v1366_v10 = vadd.f32 %v1302_v9, %v1053_v7  ;;  %v1271_v39 = vmul.f32 %v2846_v48, %v3204_v15  ;;  %v594_v11 = vrot.slane %v130_v31, 1  ;;  %v1403_v19 = vmul.f32 %v2851_v49, %v3340_v24 }
  0xa1   :  { %v890_v51 = vadd.f32 %v826_v0, %v758_v37  ;;  %v343_v2 = vadd.f32 %v279_v32, %v211_v40  ;;  %v726_v41 = vmul.f32 %v2806_v61, %v3229_v35  ;;  %v1173_v57 = vrot.slane %v130_v31, 2  ;;  %v3491_v0 = vld [vmem:[#allocation2 + $0xb0] sm:$0xff] }
  0xa2   :  { %v1498_v36 = vadd.f32 %v1434_v18, %v1366_v10  ;;  %v3481_v50 = vsel %vm608_vm0, %v558_v55, %v594_v11  ;;  %v180_v15 = vmul.f32 %v2739_v29, %v3218_v27  ;;  %v1535_v4 = vmul.f32 %v2855_v52, %v3469_v6  ;;  %v3516_v11 = vld [vmem:[#allocation2 + $0x258] sm:$0xff] }
  0xa3   :  { %v1022_v25 = vadd.f32 %v958_v44, %v890_v51  ;;  %v475_v9 = vadd.f32 %v411_v63, %v343_v2  ;;  %v858_v21 = vmul.f32 %v2809_v62, %v3353_v53  ;;  %v990_v22 = vmul.f32 %v2818_v3, %v3481_v50 }
  0xa4   :  { %v1630_v35 = vadd.f32 %v1566_v23, %v1498_v36  ;;  %v248_v55 = vmul.f32 %v2742_v30, %v3355_v60  ;;  %v380_v27 = vmul.f32 %v2749_v34, %v3477_v38  ;;  %v505_v59 = vrot.slane %v3477_v38, 1 }
  0xa5   :  { %v1335_v31 = vadd.f32 %v1271_v39, %v1022_v25  ;;  %v790_v40 = vadd.f32 %v726_v41, %v475_v9  ;;  %v541_v7 = vrot.slane %v3491_v0, 1  ;;  %v3504_v18 = vsel %vm1185_vm1, %v1137_v33, %v1173_v57  ;;  %v3528_v25 = vld [vmem:[#allocation2 + $0x260] sm:$0xff] }
  0xa6   :  { %2520 = vmatprep.mubr.msk.f32.mxu1 %vm1658_vm2, %v1630_v35  ;;  %v1303_v23 = vmul.f32 %v2846_v48, %v3247_v16  ;;  %v312_v37 = vadd.f32 %v248_v55, %v180_v15  ;;  %v695_v44 = vmul.f32 %v2806_v61, %v3259_v47  ;;  %v1435_v10 = vmul.f32 %v2851_v49, %v3376_v58 }
  0xa7   :  { %v1467_v32 = vadd.f32 %v1403_v19, %v1335_v31  ;;  %v922_v63 = vadd.f32 %v858_v21, %v790_v40  ;;  %v3514_v39 = vsel %vm608_vm0, %v505_v59, %v541_v7  ;;  %v827_v51 = vmul.f32 %v2809_v62, %v3387_v56 }
  0xa8   :  { %v444_v33 = vadd.f32 %v380_v27, %v312_v37  ;;  %v1084_v16 = vrot.slane %v3477_v38, 2  ;;  %v1120_v2 = vrot.slane %v3491_v0, 2  ;;  %v1567_v41 = vmul.f32 %v2855_v52, %v3504_v18 }
  0xa9   :  { %v1599_v47 = vadd.f32 %v1535_v4, %v1467_v32  ;;  %v1054_v19 = vadd.f32 %v990_v22, %v922_v63  ;;  %v212_v36 = vmul.f32 %v2739_v29, %v3262_v45  ;;  %v959_v15 = vmul.f32 %v2818_v3, %v3514_v39 }
  0xaa   :  { %v759_v57 = vadd.f32 %v695_v44, %v444_v33  ;;  %v280_v9 = vmul.f32 %v2742_v30, %v3390_v42  ;;  %v412_v21 = vmul.f32 %v2749_v34, %v3516_v11  ;;  %v1272_v35 = vmul.f32 %v2846_v48, %v3285_v46 }
  0xab   :  { %2473 = vmatmul.mubr.msk.f32.gmra.mxu0 %vm1658_vm2, %v1599_v47  ;;  %v1367_v4 = vadd.f32 %v1303_v23, %v1054_v19  ;;  %v523_v45 = vrot.slane %v3516_v11, 1  ;;  %v559_v22 = vrot.slane %v3528_v25, 1  ;;  %v3541_v27 = vsel %vm1185_vm1, %v1084_v16, %v1120_v2 }
  0xac   :  { %v891_v55 = vadd.f32 %v827_v51, %v759_v57  ;;  %v344_v31 = vadd.f32 %v280_v9, %v212_v36  ;;  %v727_v40 = vmul.f32 %v2806_v61, %v3296_v17  ;;  %v1102_v46 = vrot.slane %v3516_v11, 2  ;;  %v79_v51 = vld [vmem:[#allocation2 + $0xb8] sm:$0xff] }
  0xad   :  { %v1499_v59 = vadd.f32 %v1435_v10, %v1367_v4  ;;  %v3547_v23 = vsel %vm608_vm0, %v523_v45, %v559_v22  ;;  %v1138_v37 = vrot.slane %v3528_v25, 2  ;;  %v1404_v32 = vmul.f32 %v2851_v49, %v3412_v43 }
  0xae   :  { %v1023_v44 = vadd.f32 %v959_v15, %v891_v55  ;;  %v476_v63 = vadd.f32 %v412_v21, %v344_v31  ;;  %v859_v33 = vmul.f32 %v2809_v62, %v3418_v13  ;;  %v1536_v17 = vmul.f32 %v2855_v52, %v3541_v27 }
  0xaf   :  { %v1631_v16 = vadd.f32 %v1567_v41, %v1499_v59  ;;  %v181_v10 = vmul.f32 %v2739_v29, %v3238_v20  ;;  %v249_v47 = vmul.f32 %v2742_v30, %v3367_v54  ;;  %v991_v57 = vmul.f32 %v2818_v3, %v3547_v23  ;;  %v133_v59 = vld [vmem:[#allocation2 + $0x268] sm:$0xff] }
  0xb0   :  { %v1336_v19 = vadd.f32 %v1272_v35, %v1023_v44  ;;  %v791_v36 = vadd.f32 %v727_v40, %v476_v63  ;;  %v381_v15 = vmul.f32 %v2749_v34, %v3491_v0  ;;  %v3570_v52 = vsel %vm1185_vm1, %v1102_v46, %v1138_v37  ;;  %v3586_v63 = vld [vmem:[#allocation5 + $0x8] ss:$0 sm:$0xff] }
  0xb1   :  { %2521 = vmatmul.mubr.msk.f32.gmra.mxu1 %vm1658_vm2, %v1631_v16  ;;  %v313_v20 = vadd.f32 %v249_v47, %v181_v10  ;;  %v577_v41 = vrot.slane %v79_v51, 1  ;;  %v696_v9 = vmul.f32 %v2806_v61, %v3326_v26  ;;  %v1304_v35 = vmul.f32 %v2846_v48, %v3315_v14 }
  0xb2   :  { %v1468_v21 = vadd.f32 %v1404_v32, %v1336_v19  ;;  %v923_v4 = vadd.f32 %v859_v33, %v791_v36  ;;  %v1156_v45 = vrot.slane %v79_v51, 2  ;;  %v828_v40 = vmul.f32 %v2809_v62, %v3450_v28 }
  0xb3   :  { %v445_v55 = vadd.f32 %v381_v15, %v313_v20  ;;  %v3578_v31 = vsel %vm608_vm0, %v541_v7, %v577_v41  ;;  %v213_v46 = vmul.f32 %v2739_v29, %v3275_v12  ;;  %v1436_v32 = vmul.f32 %v2851_v49, %v3442_v5  ;;  %v3607_v20 = vld [vmem:[#allocation2 + $0xc0] sm:$0xff] }
  0xb4   :  { %v1600_v44 = vadd.f32 %v1536_v17, %v1468_v21  ;;  %v1055_v26 = vadd.f32 %v991_v57, %v923_v4  ;;  %v1568_v14 = vmul.f32 %v3586_v63, %v3570_v52  ;;  %v960_v7 = vmul.f32 %v2818_v3, %v3578_v31 }
  0xb5   :  { %v760_v33 = vadd.f32 %v696_v9, %v445_v55  ;;  %v281_v51 = vmul.f32 %v2742_v30, %v3401_v8  ;;  %v413_v12 = vmul.f32 %v2749_v34, %v3528_v25  ;;  %v3599_v17 = vsel %vm1185_vm1, %v1120_v2, %v1156_v45 }
  0xb6   :  { %2475 = vmatprep.mubr.msk.f32.mxu0 %vm1658_vm2, %v1600_v44  ;;  %v1368_v16 = vadd.f32 %v1304_v35, %v1055_v26  ;;  %v1273_v10 = vmul.f32 %v2846_v48, %v3340_v24  ;;  %v595_v47 = vrot.slane %v133_v59, 1  ;;  %v1405_v36 = vmul.f32 %v2851_v49, %v3469_v6 }
  0xb7   :  { %v892_v19 = vadd.f32 %v828_v40, %v760_v33  ;;  %v345_v57 = vadd.f32 %v281_v51, %v213_v46  ;;  %v728_v15 = vmul.f32 %v2806_v61, %v3353_v53  ;;  %v1174_v2 = vrot.slane %v133_v59, 2  ;;  %v3621_v40 = vld [vmem:[#allocation2 + $0xc8] sm:$0xff] }
  0xb8   :  { %v1500_v41 = vadd.f32 %v1436_v32, %v1368_v16  ;;  %v3611_v9 = vsel %vm608_vm0, %v559_v22, %v595_v47  ;;  %v182_v24 = vmul.f32 %v2739_v29, %v3355_v60  ;;  %v1537_v4 = vmul.f32 %v3586_v63, %v3599_v17  ;;  %v3646_v47 = vld [vmem:[#allocation2 + $0x270] sm:$0xff] }
  0xb9   :  { %v1024_v21 = vadd.f32 %v960_v7, %v892_v19  ;;  %v477_v35 = vadd.f32 %v413_v12, %v345_v57  ;;  %v860_v45 = vmul.f32 %v2809_v62, %v3481_v50  ;;  %v992_v55 = vmul.f32 %v2818_v3, %v3611_v9 }
  0xba   :  { %v1632_v53 = vadd.f32 %v1568_v14, %v1500_v41  ;;  %v250_v22 = vmul.f32 %v2742_v30, %v3477_v38  ;;  %v382_v60 = vmul.f32 %v2749_v34, %v3607_v20  ;;  %v506_v44 = vrot.slane %v3607_v20, 1 }
  0xbb   :  { %v1337_v59 = vadd.f32 %v1273_v10, %v1024_v21  ;;  %v792_v46 = vadd.f32 %v728_v15, %v477_v35  ;;  %v542_v26 = vrot.slane %v3621_v40, 1  ;;  %v3634_v32 = vsel %vm1185_vm1, %v1138_v37, %v1174_v2  ;;  %v3658_v21 = vld [vmem:[#allocation2 + $0x278] sm:$0xff] }
  0xbc   :  { %2523 = vmatprep.mubr.msk.f32.mxu1 %vm1658_vm2, %v1632_v53  ;;  %v1305_v14 = vmul.f32 %v2846_v48, %v3376_v58  ;;  %v314_v33 = vadd.f32 %v250_v22, %v182_v24  ;;  %v697_v7 = vmul.f32 %v2806_v61, %v3387_v56  ;;  %v1437_v16 = vmul.f32 %v2851_v49, %v3504_v18 }
  0xbd   :  { %v1469_v51 = vadd.f32 %v1405_v36, %v1337_v59  ;;  %v924_v12 = vadd.f32 %v860_v45, %v792_v46  ;;  %v3644_v10 = vsel %vm608_vm0, %v506_v44, %v542_v26  ;;  %v829_v19 = vmul.f32 %v2809_v62, %v3514_v39 }
  0xbe   :  { %v446_v37 = vadd.f32 %v382_v60, %v314_v33  ;;  %v1085_v58 = vrot.slane %v3607_v20, 2  ;;  %v1121_v57 = vrot.slane %v3621_v40, 2  ;;  %v1569_v15 = vmul.f32 %v3586_v63, %v3634_v32 }
  0xbf   :  { %v1601_v56 = vadd.f32 %v1537_v4, %v1469_v51  ;;  %v1056_v36 = vadd.f32 %v992_v55, %v924_v12  ;;  %v214_v41 = vmul.f32 %v2739_v29, %v3390_v42  ;;  %v961_v24 = vmul.f32 %v2818_v3, %v3644_v10 }
  0xc0   :  { %v761_v2 = vadd.f32 %v697_v7, %v446_v37  ;;  %v282_v35 = vmul.f32 %v2742_v30, %v3516_v11  ;;  %v414_v45 = vmul.f32 %v2749_v34, %v3646_v47  ;;  %v1274_v53 = vmul.f32 %v2846_v48, %v3412_v43 }
  0xc1   :  { %2476 = vmatmul.mubr.msk.f32.gmra.mxu0 %vm1658_vm2, %v1601_v56  ;;  %v1369_v4 = vadd.f32 %v1305_v14, %v1056_v36  ;;  %v524_v42 = vrot.slane %v3646_v47, 1  ;;  %v560_v55 = vrot.slane %v3658_v21, 1  ;;  %v3671_v60 = vsel %vm1185_vm1, %v1085_v58, %v1121_v57 }
  0xc2   :  { %v893_v22 = vadd.f32 %v829_v19, %v761_v2  ;;  %v346_v59 = vadd.f32 %v282_v35, %v214_v41  ;;  %v729_v46 = vmul.f32 %v2806_v61, %v3418_v13  ;;  %v1103_v43 = vrot.slane %v3646_v47, 2  ;;  %v82_v19 = vld [vmem:[#allocation2 + $0xd0] sm:$0xff] }
  0xc3   :  { %v1501_v44 = vadd.f32 %v1437_v16, %v1369_v4  ;;  %v3677_v14 = vsel %vm608_vm0, %v524_v42, %v560_v55  ;;  %v1139_v33 = vrot.slane %v3658_v21, 2  ;;  %v1406_v51 = vmul.f32 %v2851_v49, %v3541_v27 }
  0xc4   :  { %v1025_v7 = vadd.f32 %v961_v24, %v893_v22  ;;  %v478_v12 = vadd.f32 %v414_v45, %v346_v59  ;;  %v861_v37 = vmul.f32 %v2809_v62, %v3547_v23  ;;  %v1538_v13 = vmul.f32 %v3586_v63, %v3671_v60 }
  0xc5   :  { %v1633_v58 = vadd.f32 %v1569_v15, %v1501_v44  ;;  %v183_v16 = vmul.f32 %v2739_v29, %v3367_v54  ;;  %v251_v56 = vmul.f32 %v2742_v30, %v3491_v0  ;;  %v993_v2 = vmul.f32 %v2818_v3, %v3677_v14 }
  0xc6   :  { %v1338_v36 = vadd.f32 %v1274_v53, %v1025_v7  ;;  %v793_v41 = vadd.f32 %v729_v46, %v478_v12  ;;  %v383_v24 = vmul.f32 %v2749_v34, %v3621_v40  ;;  %v3700_v15 = vsel %vm1185_vm1, %v1103_v43, %v1139_v33  ;;  %v136_v43 = vld [vmem:[#allocation2 + $0x280] sm:$0xff] }
  0xc7   :  { %2524 = vmatmul.mubr.msk.f32.gmra.mxu1 %vm1658_vm2, %v1633_v58  ;;  %v315_v54 = vadd.f32 %v251_v56, %v183_v16  ;;  %v578_v35 = vrot.slane %v82_v19, 1  ;;  %v698_v45 = vmul.f32 %v2806_v61, %v3450_v28  ;;  %v1306_v42 = vmul.f32 %v2846_v48, %v3442_v5 }
  0xc8   :  { %v1470_v4 = vadd.f32 %v1406_v51, %v1338_v36  ;;  %v925_v53 = vadd.f32 %v861_v37, %v793_v41  ;;  %v1157_v22 = vrot.slane %v82_v19, 2  ;;  %v830_v44 = vmul.f32 %v2809_v62, %v3578_v31 }
  0xc9   :  { %v447_v59 = vadd.f32 %v383_v24, %v315_v54  ;;  %v3708_v46 = vsel %vm608_vm0, %v542_v26, %v578_v35  ;;  %v215_v7 = vmul.f32 %v2739_v29, %v3401_v8  ;;  %v1438_v51 = vmul.f32 %v2851_v49, %v3570_v52  ;;  %v3735_v54 = vld [vmem:[#allocation2 + $0xd8] sm:$0xff] }
  0xca   :  { %v1602_v12 = vadd.f32 %v1538_v13, %v1470_v4  ;;  %v1057_v28 = vadd.f32 %v993_v2, %v925_v53  ;;  %v1570_v5 = vmul.f32 %v3586_v63, %v3700_v15  ;;  %v962_v26 = vmul.f32 %v2818_v3, %v3708_v46 }
  0xcb   :  { %v762_v37 = vadd.f32 %v698_v45, %v447_v59  ;;  %v283_v19 = vmul.f32 %v2742_v30, %v3528_v25  ;;  %v415_v58 = vmul.f32 %v2749_v34, %v3658_v21  ;;  %v3727_v13 = vsel %vm1185_vm1, %v1121_v57, %v1157_v22 }
  0xcc   :  { %2478 = vmatprep.mubr.msk.f32.mxu0 %vm1658_vm2, %v1602_v12  ;;  %v1370_v8 = vadd.f32 %v1306_v42, %v1057_v28  ;;  %v1275_v16 = vmul.f32 %v2846_v48, %v3469_v6  ;;  %v596_v56 = vrot.slane %v136_v43, 1  ;;  %v1407_v41 = vmul.f32 %v2851_v49, %v3599_v17 }
  0xcd   :  { %v894_v36 = vadd.f32 %v830_v44, %v762_v37  ;;  %v347_v2 = vadd.f32 %v283_v19, %v215_v7  ;;  %v730_v24 = vmul.f32 %v2806_v61, %v3481_v50  ;;  %v1175_v57 = vrot.slane %v136_v43, 2  ;;  %v3749_v44 = vld [vmem:[#allocation2 + $0xe0] sm:$0xff] }
  0xce   :  { %v1502_v35 = vadd.f32 %v1438_v51, %v1370_v8  ;;  %v3739_v45 = vsel %vm608_vm0, %v560_v55, %v596_v56  ;;  %v184_v6 = vmul.f32 %v2739_v29, %v3477_v38  ;;  %v1539_v53 = vmul.f32 %v3586_v63, %v3727_v13  ;;  %v3774_v56 = vld [vmem:[#allocation2 + $0x288] sm:$0xff] }
  0xcf   :  { %v1026_v4 = vadd.f32 %v962_v26, %v894_v36  ;;  %v479_v42 = vadd.f32 %v415_v58, %v347_v2  ;;  %v862_v22 = vmul.f32 %v2809_v62, %v3611_v9  ;;  %v994_v59 = vmul.f32 %v2818_v3, %v3739_v45 }
  0xd0   :  { %v1634_v50 = vadd.f32 %v1570_v5, %v1502_v35  ;;  %v252_v55 = vmul.f32 %v2742_v30, %v3607_v20  ;;  %v384_v38 = vmul.f32 %v2749_v34, %v3735_v54  ;;  %v507_v12 = vrot.slane %v3735_v54, 1 }
  0xd1   :  { %v1339_v43 = vadd.f32 %v1275_v16, %v1026_v4  ;;  %v794_v7 = vadd.f32 %v730_v24, %v479_v42  ;;  %v543_v28 = vrot.slane %v3749_v44, 1  ;;  %v3762_v51 = vsel %vm1185_vm1, %v1139_v33, %v1175_v57  ;;  %v3786_v4 = vld [vmem:[#allocation2 + $0x290] sm:$0xff] }
  0xd2   :  { %2526 = vmatprep.mubr.msk.f32.mxu1 %vm1658_vm2, %v1634_v50  ;;  %v1307_v5 = vmul.f32 %v2846_v48, %v3504_v18  ;;  %v316_v37 = vadd.f32 %v252_v55, %v184_v6  ;;  %v699_v26 = vmul.f32 %v2806_v61, %v3514_v39  ;;  %v1439_v8 = vmul.f32 %v2851_v49, %v3634_v32 }
  0xd3   :  { %v1471_v19 = vadd.f32 %v1407_v41, %v1339_v43  ;;  %v926_v58 = vadd.f32 %v862_v22, %v794_v7  ;;  %v3772_v16 = vsel %vm608_vm0, %v507_v12, %v543_v28  ;;  %v831_v36 = vmul.f32 %v2809_v62, %v3644_v10 }
  0xd4   :  { %v448_v33 = vadd.f32 %v384_v38, %v316_v37  ;;  %v1086_v18 = vrot.slane %v3735_v54, 2  ;;  %v1122_v2 = vrot.slane %v3749_v44, 2  ;;  %v1571_v24 = vmul.f32 %v3586_v63, %v3762_v51 }
  0xd5   :  { %v1603_v39 = vadd.f32 %v1539_v53, %v1471_v19  ;;  %v1058_v41 = vadd.f32 %v994_v59, %v926_v58  ;;  %v216_v35 = vmul.f32 %v2739_v29, %v3516_v11  ;;  %v963_v6 = vmul.f32 %v2818_v3, %v3772_v16 }
  0xd6   :  { %v763_v57 = vadd.f32 %v699_v26, %v448_v33  ;;  %v284_v42 = vmul.f32 %v2742_v30, %v3646_v47  ;;  %v416_v22 = vmul.f32 %v2749_v34, %v3774_v56  ;;  %v1276_v50 = vmul.f32 %v2846_v48, %v3541_v27 }
  0xd7   :  { %2479 = vmatmul.mubr.msk.f32.gmra.mxu0 %vm1658_vm2, %v1603_v39  ;;  %v1371_v53 = vadd.f32 %v1307_v5, %v1058_v41  ;;  %v525_v11 = vrot.slane %v3774_v56, 1  ;;  %v561_v59 = vrot.slane %v3786_v4, 1  ;;  %v3799_v38 = vsel %vm1185_vm1, %v1086_v18, %v1122_v2 }
  0xd8   :  { %v895_v55 = vadd.f32 %v831_v36, %v763_v57  ;;  %v348_v43 = vadd.f32 %v284_v42, %v216_v35  ;;  %v731_v7 = vmul.f32 %v2806_v61, %v3547_v23  ;;  %v1104_v27 = vrot.slane %v3774_v56, 2  ;;  %v85_v36 = vld [vmem:[#allocation2 + $0xe8] sm:$0xff] }
  0xd9   :  { %v1503_v12 = vadd.f32 %v1439_v8, %v1371_v53  ;;  %v3805_v5 = vsel %vm608_vm0, %v525_v11, %v561_v59  ;;  %v1140_v37 = vrot.slane %v3786_v4, 2  ;;  %v1408_v19 = vmul.f32 %v2851_v49, %v3671_v60 }
  0xda   :  { %v1027_v26 = vadd.f32 %v963_v6, %v895_v55  ;;  %v480_v58 = vadd.f32 %v416_v22, %v348_v43  ;;  %v863_v33 = vmul.f32 %v2809_v62, %v3677_v14  ;;  %v1540_v23 = vmul.f32 %v3586_v63, %v3799_v38 }
  0xdb   :  { %v1635_v18 = vadd.f32 %v1571_v24, %v1503_v12  ;;  %v185_v8 = vmul.f32 %v2739_v29, %v3491_v0  ;;  %v253_v39 = vmul.f32 %v2742_v30, %v3621_v40  ;;  %v995_v57 = vmul.f32 %v2818_v3, %v3805_v5 }
  0xdc   :  { %v1340_v41 = vadd.f32 %v1276_v50, %v1027_v26  ;;  %v795_v35 = vadd.f32 %v731_v7, %v480_v58  ;;  %v385_v6 = vmul.f32 %v2749_v34, %v3749_v44  ;;  %v3828_v24 = vsel %vm1185_vm1, %v1104_v27, %v1140_v37  ;;  %v139_v27 = vld [vmem:[#allocation2 + $0x298] sm:$0xff] }
  0xdd   :  { %2527 = vmatmul.mubr.msk.f32.gmra.mxu1 %vm1658_vm2, %v1635_v18  ;;  %v317_v0 = vadd.f32 %v253_v39, %v185_v8  ;;  %v579_v42 = vrot.slane %v85_v36, 1  ;;  %v700_v22 = vmul.f32 %v2806_v61, %v3578_v31  ;;  %v1308_v11 = vmul.f32 %v2846_v48, %v3570_v52 }
  0xde   :  { %v1472_v53 = vadd.f32 %v1408_v19, %v1340_v41  ;;  %v927_v50 = vadd.f32 %v863_v33, %v795_v35  ;;  %v1158_v55 = vrot.slane %v85_v36, 2  ;;  %v832_v12 = vmul.f32 %v2809_v62, %v3708_v46 }
  0xdf   :  { %v449_v43 = vadd.f32 %v385_v6, %v317_v0  ;;  %v3836_v7 = vsel %vm608_vm0, %v543_v28, %v579_v42  ;;  %v217_v26 = vmul.f32 %v2739_v29, %v3528_v25  ;;  %v1440_v19 = vmul.f32 %v2851_v49, %v3700_v15  ;;  %v3863_v0 = vld [vmem:[#allocation2 + $0xf0] sm:$0xff] }
  0xe0   :  { %v1604_v58 = vadd.f32 %v1540_v23, %v1472_v53  ;;  %v1059_v31 = vadd.f32 %v995_v57, %v927_v50  ;;  %v1572_v52 = vmul.f32 %v3586_v63, %v3828_v24  ;;  %v964_v28 = vmul.f32 %v2818_v3, %v3836_v7 }
  0xe1   :  { %v764_v33 = vadd.f32 %v700_v22, %v449_v43  ;;  %v285_v36 = vmul.f32 %v2742_v30, %v3658_v21  ;;  %v417_v18 = vmul.f32 %v2749_v34, %v3786_v4  ;;  %v3855_v23 = vsel %vm1185_vm1, %v1122_v2, %v1158_v55 }
  0xe2   :  { %2481 = vmatprep.mubr.msk.f32.mxu0 %vm1658_vm2, %v1604_v58  ;;  %v1372_v25 = vadd.f32 %v1308_v11, %v1059_v31  ;;  %v1277_v8 = vmul.f32 %v2846_v48, %v3599_v17  ;;  %v597_v39 = vrot.slane %v139_v27, 1  ;;  %v1409_v35 = vmul.f32 %v2851_v49, %v3727_v13 }
  0xe3   :  { %v896_v41 = vadd.f32 %v832_v12, %v764_v33  ;;  %v349_v57 = vadd.f32 %v285_v36, %v217_v26  ;;  %v732_v6 = vmul.f32 %v2806_v61, %v3611_v9  ;;  %v1176_v2 = vrot.slane %v139_v27, 2  ;;  %v3877_v12 = vld [vmem:[#allocation2 + $0xf8] sm:$0xff] }
  0xe4   :  { %v1504_v42 = vadd.f32 %v1440_v19, %v1372_v25  ;;  %v3867_v22 = vsel %vm608_vm0, %v561_v59, %v597_v39  ;;  %v186_v17 = vmul.f32 %v2739_v29, %v3607_v20  ;;  %v1541_v50 = vmul.f32 %v3586_v63, %v3855_v23  ;;  %v3902_v39 = vld [vmem:[#allocation2 + $0x2a0] sm:$0xff] }
  0xe5   :  { %v1028_v53 = vadd.f32 %v964_v28, %v896_v41  ;;  %v481_v11 = vadd.f32 %v417_v18, %v349_v57  ;;  %v864_v55 = vmul.f32 %v2809_v62, %v3739_v45  ;;  %v996_v43 = vmul.f32 %v2818_v3, %v3867_v22 }
  0xe6   :  { %v1636_v9 = vadd.f32 %v1572_v52, %v1504_v42  ;;  %v254_v59 = vmul.f32 %v2742_v30, %v3735_v54  ;;  %v386_v20 = vmul.f32 %v2749_v34, %v3863_v0  ;;  %v508_v58 = vrot.slane %v3863_v0, 1 }
  0xe7   :  { %v1341_v27 = vadd.f32 %v1277_v8, %v1028_v53  ;;  %v796_v26 = vadd.f32 %v732_v6, %v481_v11  ;;  %v544_v31 = vrot.slane %v3877_v12, 1  ;;  %v3890_v19 = vsel %vm1185_vm1, %v1140_v37, %v1176_v2  ;;  %v3914_v53 = vld [vmem:[#allocation2 + $0x2a8] sm:$0xff] }
  0xe8   :  { %2529 = vmatprep.mubr.msk.f32.mxu1 %vm1658_vm2, %v1636_v9  ;;  %v1309_v52 = vmul.f32 %v2846_v48, %v3634_v32  ;;  %v318_v33 = vadd.f32 %v254_v59, %v186_v17  ;;  %v701_v28 = vmul.f32 %v2806_v61, %v3644_v10  ;;  %v1441_v25 = vmul.f32 %v2851_v49, %v3762_v51 }
  0xe9   :  { %v1473_v36 = vadd.f32 %v1409_v35, %v1341_v27  ;;  %v928_v18 = vadd.f32 %v864_v55, %v796_v26  ;;  %v3900_v8 = vsel %vm608_vm0, %v508_v58, %v544_v31  ;;  %v833_v41 = vmul.f32 %v2809_v62, %v3772_v16 }
  0xea   :  { %v450_v37 = vadd.f32 %v386_v20, %v318_v33  ;;  %v1087_v32 = vrot.slane %v3863_v0, 2  ;;  %v1123_v57 = vrot.slane %v3877_v12, 2  ;;  %v1573_v6 = vmul.f32 %v3586_v63, %v3890_v19 }
  0xeb   :  { %v1605_v10 = vadd.f32 %v1541_v50, %v1473_v36  ;;  %v1060_v35 = vadd.f32 %v996_v43, %v928_v18  ;;  %v218_v42 = vmul.f32 %v2739_v29, %v3646_v47  ;;  %v965_v17 = vmul.f32 %v2818_v3, %v3900_v8 }
  0xec   :  { %v765_v2 = vadd.f32 %v701_v28, %v450_v37  ;;  %v286_v11 = vmul.f32 %v2742_v30, %v3774_v56  ;;  %v418_v55 = vmul.f32 %v2749_v34, %v3902_v39  ;;  %v1278_v9 = vmul.f32 %v2846_v48, %v3671_v60 }
  0xed   :  { %2482 = vmatmul.mubr.msk.f32.gmra.mxu0 %vm1658_vm2, %v1605_v10  ;;  %v1373_v50 = vadd.f32 %v1309_v52, %v1060_v35  ;;  %v526_v47 = vrot.slane %v3902_v39, 1  ;;  %v562_v43 = vrot.slane %v3914_v53, 1  ;;  %v3927_v20 = vsel %vm1185_vm1, %v1087_v32, %v1123_v57 }
  0xee   :  { %v897_v59 = vadd.f32 %v833_v41, %v765_v2  ;;  %v350_v27 = vadd.f32 %v286_v11, %v218_v42  ;;  %v733_v26 = vmul.f32 %v2806_v61, %v3677_v14  ;;  %v1105_v60 = vrot.slane %v3902_v39, 2  ;;  %v88_v41 = vld [vmem:[#allocation2 + $0x100] sm:$0xff] }
  0xef   :  { %v1505_v58 = vadd.f32 %v1441_v25, %v1373_v50  ;;  %v3933_v52 = vsel %vm608_vm0, %v526_v47, %v562_v43  ;;  %v1141_v33 = vrot.slane %v3914_v53, 2  ;;  %v1410_v36 = vmul.f32 %v2851_v49, %v3799_v38 }
  0xf0   :  { %v1029_v28 = vadd.f32 %v965_v17, %v897_v59  ;;  %v482_v18 = vadd.f32 %v418_v55, %v350_v27  ;;  %v865_v37 = vmul.f32 %v2809_v62, %v3805_v5  ;;  %v1542_v14 = vmul.f32 %v3586_v63, %v3927_v20 }
  0xf1   :  { %v1637_v32 = vadd.f32 %v1573_v6, %v1505_v58  ;;  %v187_v25 = vmul.f32 %v2739_v29, %v3621_v40  ;;  %v255_v10 = vmul.f32 %v2742_v30, %v3749_v44  ;;  %v997_v2 = vmul.f32 %v2818_v3, %v3933_v52 }
  0xf2   :  { %v1342_v35 = vadd.f32 %v1278_v9, %v1029_v28  ;;  %v797_v42 = vadd.f32 %v733_v26, %v482_v18  ;;  %v387_v17 = vmul.f32 %v2749_v34, %v3877_v12  ;;  %v3956_v6 = vsel %vm1185_vm1, %v1105_v60, %v1141_v33  ;;  %v142_v60 = vld [vmem:[#allocation2 + $0x2b0] sm:$0xff] }
  0xf3   :  { %2530 = vmatmul.mubr.msk.f32.gmra.mxu1 %vm1658_vm2, %v1637_v32  ;;  %v319_v40 = vadd.f32 %v255_v10, %v187_v25  ;;  %v580_v11 = vrot.slane %v88_v41, 1  ;;  %v702_v55 = vmul.f32 %v2806_v61, %v3708_v46  ;;  %v1310_v47 = vmul.f32 %v2846_v48, %v3700_v15 }
  0xf4   :  { %v1474_v50 = vadd.f32 %v1410_v36, %v1342_v35  ;;  %v929_v9 = vadd.f32 %v865_v37, %v797_v42  ;;  %v1159_v59 = vrot.slane %v88_v41, 2  ;;  %v834_v58 = vmul.f32 %v2809_v62, %v3836_v7 }
  0xf5   :  { %v451_v27 = vadd.f32 %v387_v17, %v319_v40  ;;  %v3964_v26 = vsel %vm608_vm0, %v544_v31, %v580_v11  ;;  %v219_v28 = vmul.f32 %v2739_v29, %v3658_v21  ;;  %v1442_v36 = vmul.f32 %v2851_v49, %v3828_v24  ;;  %v3991_v40 = vld [vmem:[#allocation2 + $0x108] sm:$0xff] }
  0xf6   :  { %v1606_v18 = vadd.f32 %v1542_v14, %v1474_v50  ;;  %v1061_v46 = vadd.f32 %v997_v2, %v929_v9  ;;  %v1574_v15 = vmul.f32 %v3586_v63, %v3956_v6  ;;  %v966_v31 = vmul.f32 %v2818_v3, %v3964_v26 }
  0xf7   :  { %v766_v37 = vadd.f32 %v702_v55, %v451_v27  ;;  %v287_v41 = vmul.f32 %v2742_v30, %v3786_v4  ;;  %v419_v32 = vmul.f32 %v2749_v34, %v3914_v53  ;;  %v3983_v14 = vsel %vm1185_vm1, %v1123_v57, %v1159_v59 }
  0xf8   :  { %2484 = vmatprep.mubr.msk.f32.mxu0 %vm1658_vm2, %v1606_v18  ;;  %v1374_v21 = vadd.f32 %v1310_v47, %v1061_v46  ;;  %v1279_v25 = vmul.f32 %v2846_v48, %v3727_v13  ;;  %v598_v10 = vrot.slane %v142_v60, 1  ;;  %v1411_v42 = vmul.f32 %v2851_v49, %v3855_v23 }
  0xf9   :  { %v898_v35 = vadd.f32 %v834_v58, %v766_v37  ;;  %v351_v2 = vadd.f32 %v287_v41, %v219_v28  ;;  %v734_v17 = vmul.f32 %v2806_v61, %v3739_v45  ;;  %v1177_v57 = vrot.slane %v142_v60, 2  ;;  %v4005_v58 = vld [vmem:[#allocation2 + $0x110] sm:$0xff] }
  0xfa   :  { %v1506_v11 = vadd.f32 %v1442_v36, %v1374_v21  ;;  %v3995_v55 = vsel %vm608_vm0, %v562_v43, %v598_v10  ;;  %v188_v13 = vmul.f32 %v2739_v29, %v3735_v54  ;;  %v1543_v9 = vmul.f32 %v3586_v63, %v3983_v14  ;;  %v4030_v10 = vld [vmem:[#allocation2 + $0x2b8] sm:$0xff] }
  0xfb   :  { %v1030_v50 = vadd.f32 %v966_v31, %v898_v35  ;;  %v483_v47 = vadd.f32 %v419_v32, %v351_v2  ;;  %v866_v59 = vmul.f32 %v2809_v62, %v3867_v22  ;;  %v998_v27 = vmul.f32 %v2818_v3, %v3995_v55 }
  0xfc   :  { %v1638_v45 = vadd.f32 %v1574_v15, %v1506_v11  ;;  %v256_v43 = vmul.f32 %v2742_v30, %v3863_v0  ;;  %v388_v54 = vmul.f32 %v2749_v34, %v3991_v40  ;;  %v509_v18 = vrot.slane %v3991_v40, 1 }
  0xfd   :  { %v1343_v60 = vadd.f32 %v1279_v25, %v1030_v50  ;;  %v798_v28 = vadd.f32 %v734_v17, %v483_v47  ;;  %v545_v46 = vrot.slane %v4005_v58, 1  ;;  %v4018_v36 = vsel %vm1185_vm1, %v1141_v33, %v1177_v57  ;;  %v4042_v50 = vld [vmem:[#allocation2 + $0x2c0] sm:$0xff] }
  0xfe   :  { %2532 = vmatprep.mubr.msk.f32.mxu1 %vm1658_vm2, %v1638_v45  ;;  %v1311_v15 = vmul.f32 %v2846_v48, %v3762_v51  ;;  %v320_v37 = vadd.f32 %v256_v43, %v188_v13  ;;  %v703_v31 = vmul.f32 %v2806_v61, %v3772_v16  ;;  %v1443_v21 = vmul.f32 %v2851_v49, %v3890_v19 }
  0xff   :  { %v1475_v41 = vadd.f32 %v1411_v42, %v1343_v60  ;;  %v930_v32 = vadd.f32 %v866_v59, %v798_v28  ;;  %v4028_v25 = vsel %vm608_vm0, %v509_v18, %v545_v46  ;;  %v835_v35 = vmul.f32 %v2809_v62, %v3900_v8 }
 0x100   :  { %v452_v33 = vadd.f32 %v388_v54, %v320_v37  ;;  %v1088_v51 = vrot.slane %v3991_v40, 2  ;;  %v1124_v2 = vrot.slane %v4005_v58, 2  ;;  %v1575_v17 = vmul.f32 %v3586_v63, %v4018_v36 }
 0x101   :  { %v1607_v16 = vadd.f32 %v1543_v9, %v1475_v41  ;;  %v1062_v42 = vadd.f32 %v998_v27, %v930_v32  ;;  %v220_v11 = vmul.f32 %v2739_v29, %v3774_v56  ;;  %v967_v13 = vmul.f32 %v2818_v3, %v4028_v25 }
 0x102   :  { %v767_v57 = vadd.f32 %v703_v31, %v452_v33  ;;  %v288_v47 = vmul.f32 %v2742_v30, %v3902_v39  ;;  %v420_v59 = vmul.f32 %v2749_v34, %v4030_v10  ;;  %v1280_v45 = vmul.f32 %v2846_v48, %v3799_v38 }
 0x103   :  { %2485 = vmatmul.mubr.msk.f32.gmra.mxu0 %vm1658_vm2, %v1607_v16  ;;  %v1375_v9 = vadd.f32 %v1311_v15, %v1062_v42  ;;  %v527_v56 = vrot.slane %v4030_v10, 1  ;;  %v563_v27 = vrot.slane %v4042_v50, 1  ;;  %v4055_v54 = vsel %vm1185_vm1, %v1088_v51, %v1124_v2 }
 0x104   :  { %v899_v43 = vadd.f32 %v835_v35, %v767_v57  ;;  %v352_v60 = vadd.f32 %v288_v47, %v220_v11  ;;  %v735_v28 = vmul.f32 %v2806_v61, %v3805_v5  ;;  %v1106_v38 = vrot.slane %v4030_v10, 2  ;;  %v91_v35 = vld [vmem:[#allocation2 + $0x118] sm:$0xff] }
 0x105   :  { %v1507_v18 = vadd.f32 %v1443_v21, %v1375_v9  ;;  %v4061_v15 = vsel %vm608_vm0, %v527_v56, %v563_v27  ;;  %v1142_v37 = vrot.slane %v4042_v50, 2  ;;  %v1412_v41 = vmul.f32 %v2851_v49, %v3927_v20 }
 0x106   :  { %v1031_v31 = vadd.f32 %v967_v13, %v899_v43  ;;  %v484_v32 = vadd.f32 %v420_v59, %v352_v60  ;;  %v867_v33 = vmul.f32 %v2809_v62, %v3933_v52  ;;  %v1544_v5 = vmul.f32 %v3586_v63, %v4055_v54 }
 0x107   :  { %v1639_v51 = vadd.f32 %v1575_v17, %v1507_v18  ;;  %v189_v21 = vmul.f32 %v2739_v29, %v3749_v44  ;;  %v257_v16 = vmul.f32 %v2742_v30, %v3877_v12  ;;  %v999_v57 = vmul.f32 %v2818_v3, %v4061_v15 }
 0x108   :  { %v1344_v42 = vadd.f32 %v1280_v45, %v1031_v31  ;;  %v799_v11 = vadd.f32 %v735_v28, %v484_v32  ;;  %v389_v13 = vmul.f32 %v2749_v34, %v4005_v58  ;;  %v4084_v17 = vsel %vm1185_vm1, %v1106_v38, %v1142_v37  ;;  %v145_v38 = vld [vmem:[#allocation2 + $0x2c8] sm:$0xff] }
 0x109   :  { %2533 = vmatmul.mubr.msk.f32.gmra.mxu1 %vm1658_vm2, %v1639_v51  ;;  %v321_v44 = vadd.f32 %v257_v16, %v189_v21  ;;  %v581_v47 = vrot.slane %v91_v35, 1  ;;  %v704_v59 = vmul.f32 %v2806_v61, %v3836_v7  ;;  %v1312_v56 = vmul.f32 %v2846_v48, %v3828_v24 }
 0x10a   :  { %v1476_v9 = vadd.f32 %v1412_v41, %v1344_v42  ;;  %v931_v45 = vadd.f32 %v867_v33, %v799_v11  ;;  %v1160_v43 = vrot.slane %v91_v35, 2  ;;  %v836_v18 = vmul.f32 %v2809_v62, %v3964_v26 }
 0x10b   :  { %v453_v60 = vadd.f32 %v389_v13, %v321_v44  ;;  %v4092_v28 = vsel %vm608_vm0, %v545_v46, %v581_v47  ;;  %v221_v31 = vmul.f32 %v2739_v29, %v3786_v4  ;;  %v1444_v41 = vmul.f32 %v2851_v49, %v3956_v6  ;;  %v4119_v44 = vld [vmem:[#allocation2 + $0x120] sm:$0xff] }
 0x10c   :  { %v1608_v32 = vadd.f32 %v1544_v5, %v1476_v9  ;;  %v1063_v7 = vadd.f32 %v999_v57, %v931_v45  ;;  %v1576_v24 = vmul.f32 %v3586_v63, %v4084_v17  ;;  %v968_v46 = vmul.f32 %v2818_v3, %v4092_v28 }
 0x10d   :  { %v768_v33 = vadd.f32 %v704_v59, %v453_v60  ;;  %v289_v35 = vmul.f32 %v2742_v30, %v3914_v53  ;;  %v421_v51 = vmul.f32 %v2749_v34, %v4042_v50  ;;  %v4111_v5 = vsel %vm1185_vm1, %v1124_v2, %v1160_v43 }
 0x10e   :  { %2487 = vmatprep.mubr.msk.f32.mxu0 %vm1658_vm2, %v1608_v32  ;;  %v1376_v4 = vadd.f32 %v1312_v56, %v1063_v7  ;;  %v1281_v21 = vmul.f32 %v2846_v48, %v3855_v23  ;;  %v599_v16 = vrot.slane %v145_v38, 1  ;;  %v1413_v11 = vmul.f32 %v2851_v49, %v3983_v14 }
 0x10f   :  { %v900_v42 = vadd.f32 %v836_v18, %v768_v33  ;;  %v353_v57 = vadd.f32 %v289_v35, %v221_v31  ;;  %v736_v13 = vmul.f32 %v2806_v61, %v3867_v22  ;;  %v1178_v2 = vrot.slane %v145_v38, 2  ;;  %v4133_v18 = vld [vmem:[#allocation2 + $0x128] sm:$0xff] }
 0x110   :  { %v1508_v47 = vadd.f32 %v1444_v41, %v1376_v4  ;;  %v4123_v59 = vsel %vm608_vm0, %v563_v27, %v599_v16  ;;  %v190_v23 = vmul.f32 %v2739_v29, %v3863_v0  ;;  %v1545_v45 = vmul.f32 %v3586_v63, %v4111_v5  ;;  %v4158_v16 = vld [vmem:[#allocation2 + $0x2d0] sm:$0xff] }
 0x111   :  { %v1032_v9 = vadd.f32 %v968_v46, %v900_v42  ;;  %v485_v56 = vadd.f32 %v421_v51, %v353_v57  ;;  %v868_v43 = vmul.f32 %v2809_v62, %v3995_v55  ;;  %v1000_v60 = vmul.f32 %v2818_v3, %v4123_v59 }
 0x112   :  { %v1640_v22 = vadd.f32 %v1576_v24, %v1508_v47  ;;  %v258_v27 = vmul.f32 %v2742_v30, %v3991_v40  ;;  %v390_v0 = vmul.f32 %v2749_v34, %v4119_v44  ;;  %v510_v32 = vrot.slane %v4119_v44, 1 }
 0x113   :  { %v1345_v38 = vadd.f32 %v1281_v21, %v1032_v9  ;;  %v800_v31 = vadd.f32 %v736_v13, %v485_v56  ;;  %v546_v7 = vrot.slane %v4133_v18, 1  ;;  %v4146_v41 = vsel %vm1185_vm1, %v1142_v37, %v1178_v2  ;;  %v4170_v9 = vld [vmem:[#allocation2 + $0x2d8] sm:$0xff] }
 0x114   :  { %2535 = vmatprep.mubr.msk.f32.mxu1 %vm1658_vm2, %v1640_v22  ;;  %v1313_v24 = vmul.f32 %v2846_v48, %v3890_v19  ;;  %v322_v33 = vadd.f32 %v258_v27, %v190_v23  ;;  %v705_v46 = vmul.f32 %v2806_v61, %v3900_v8  ;;  %v1445_v4 = vmul.f32 %v2851_v49, %v4018_v36 }
 0x115   :  { %v1477_v35 = vadd.f32 %v1413_v11, %v1345_v38  ;;  %v932_v51 = vadd.f32 %v868_v43, %v800_v31  ;;  %v4156_v21 = vsel %vm608_vm0, %v510_v32, %v546_v7  ;;  %v837_v42 = vmul.f32 %v2809_v62, %v4028_v25 }
 0x116   :  { %v454_v37 = vadd.f32 %v390_v0, %v322_v33  ;;  %v1089_v19 = vrot.slane %v4119_v44, 2  ;;  %v1125_v57 = vrot.slane %v4133_v18, 2  ;;  %v1577_v13 = vmul.f32 %v3586_v63, %v4146_v41 }
 0x117   :  { %v1609_v8 = vadd.f32 %v1545_v45, %v1477_v35  ;;  %v1064_v11 = vadd.f32 %v1000_v60, %v932_v51  ;;  %v222_v47 = vmul.f32 %v2739_v29, %v3902_v39  ;;  %v969_v23 = vmul.f32 %v2818_v3, %v4156_v21 }
 0x118   :  { %v769_v2 = vadd.f32 %v705_v46, %v454_v37  ;;  %v290_v56 = vmul.f32 %v2742_v30, %v4030_v10  ;;  %v422_v43 = vmul.f32 %v2749_v34, %v4158_v16  ;;  %v1282_v22 = vmul.f32 %v2846_v48, %v3927_v20 }
 0x119   :  { %2488 = vmatmul.mubr.msk.f32.gmra.mxu0 %vm1658_vm2, %v1609_v8  ;;  %v1377_v45 = vadd.f32 %v1313_v24, %v1064_v11  ;;  %v528_v39 = vrot.slane %v4158_v16, 1  ;;  %v564_v60 = vrot.slane %v4170_v9, 1  ;;  %v4183_v0 = vsel %vm1185_vm1, %v1089_v19, %v1125_v57 }
 0x11a   :  { %v901_v27 = vadd.f32 %v837_v42, %v769_v2  ;;  %v354_v38 = vadd.f32 %v290_v56, %v222_v47  ;;  %v737_v31 = vmul.f32 %v2806_v61, %v3933_v52  ;;  %v1107_v20 = vrot.slane %v4158_v16, 2  ;;  %v94_v42 = vld [vmem:[#allocation2 + $0x130] sm:$0xff] }
 0x11b   :  { %v1509_v32 = vadd.f32 %v1445_v4, %v1377_v45  ;;  %v4189_v24 = vsel %vm608_vm0, %v528_v39, %v564_v60  ;;  %v1143_v33 = vrot.slane %v4170_v9, 2  ;;  %v1414_v35 = vmul.f32 %v2851_v49, %v4055_v54 }
 0x11c   :  { %v1033_v46 = vadd.f32 %v969_v23, %v901_v27  ;;  %v486_v51 = vadd.f32 %v422_v43, %v354_v38  ;;  %v869_v37 = vmul.f32 %v2809_v62, %v4061_v15  ;;  %v1546_v52 = vmul.f32 %v3586_v63, %v4183_v0 }
 0x11d   :  { %v1641_v19 = vadd.f32 %v1577_v13, %v1509_v32  ;;  %v191_v4 = vmul.f32 %v2739_v29, %v3877_v12  ;;  %v259_v8 = vmul.f32 %v2742_v30, %v4005_v58  ;;  %v1001_v2 = vmul.f32 %v2818_v3, %v4189_v24 }
 0x11e   :  { %v1346_v11 = vadd.f32 %v1282_v22, %v1033_v46  ;;  %v801_v47 = vadd.f32 %v737_v31, %v486_v51  ;;  %v391_v23 = vmul.f32 %v2749_v34, %v4133_v18  ;;  %v4212_v13 = vsel %vm1185_vm1, %v1107_v20, %v1143_v33  ;;  %v148_v20 = vld [vmem:[#allocation2 + $0x2e0] sm:$0xff] }
 0x11f   :  { %2536 = vmatmul.mubr.msk.f32.gmra.mxu1 %vm1658_vm2, %v1641_v19  ;;  %v323_v12 = vadd.f32 %v259_v8, %v191_v4  ;;  %v582_v56 = vrot.slane %v94_v42, 1  ;;  %v706_v43 = vmul.f32 %v2806_v61, %v3964_v26  ;;  %v1314_v39 = vmul.f32 %v2846_v48, %v3956_v6 }
 0x120   :  { %v1478_v45 = vadd.f32 %v1414_v35, %v1346_v11  ;;  %v933_v22 = vadd.f32 %v869_v37, %v801_v47  ;;  %v1161_v27 = vrot.slane %v94_v42, 2  ;;  %v838_v32 = vmul.f32 %v2809_v62, %v4092_v28 }
 0x121   :  { %v455_v38 = vadd.f32 %v391_v23, %v323_v12  ;;  %v4220_v31 = vsel %vm608_vm0, %v546_v7, %v582_v56  ;;  %v223_v46 = vmul.f32 %v2739_v29, %v3914_v53  ;;  %v1446_v35 = vmul.f32 %v2851_v49, %v4084_v17  ;;  %v4247_v12 = vld [vmem:[#allocation2 + $0x138] sm:$0xff] }
 0x122   :  { %v1610_v51 = vadd.f32 %v1546_v52, %v1478_v45  ;;  %v1065_v26 = vadd.f32 %v1001_v2, %v933_v22  ;;  %v1578_v6 = vmul.f32 %v3586_v63, %v4212_v13  ;;  %v970_v7 = vmul.f32 %v2818_v3, %v4220_v31 }
 0x123   :  { %v770_v37 = vadd.f32 %v706_v43, %v455_v38  ;;  %v291_v42 = vmul.f32 %v2742_v30, %v4042_v50  ;;  %v423_v19 = vmul.f32 %v2749_v34, %v4170_v9  ;;  %v4239_v52 = vsel %vm1185_vm1, %v1125_v57, %v1161_v27 }
 0x124   :  { %2490 = vmatprep.mubr.msk.f32.mxu0 %vm1658_vm2, %v1610_v51  ;;  %v1378_v53 = vadd.f32 %v1314_v39, %v1065_v26  ;;  %v1283_v4 = vmul.f32 %v2846_v48, %v3983_v14  ;;  %v600_v8 = vrot.slane %v148_v20, 1  ;;  %v1415_v47 = vmul.f32 %v2851_v49, %v4111_v5 }
 0x125   :  { %v902_v11 = vadd.f32 %v838_v32, %v770_v37  ;;  %v355_v2 = vadd.f32 %v291_v42, %v223_v46  ;;  %v738_v23 = vmul.f32 %v2806_v61, %v3995_v55  ;;  %v1179_v57 = vrot.slane %v148_v20, 2  ;;  %v4261_v32 = vld [vmem:[#allocation2 + $0x140] sm:$0xff] }
 0x126   :  { %v1510_v56 = vadd.f32 %v1446_v35, %v1378_v53  ;;  %v4251_v43 = vsel %vm608_vm0, %v564_v60, %v600_v8  ;;  %v192_v14 = vmul.f32 %v2739_v29, %v3991_v40  ;;  %v1547_v22 = vmul.f32 %v3586_v63, %v4239_v52 }
 0x127   :  { %v1034_v45 = vadd.f32 %v970_v7, %v902_v11  ;;  %v487_v39 = vadd.f32 %v423_v19, %v355_v2  ;;  %v870_v27 = vmul.f32 %v2809_v62, %v4123_v59  ;;  %v1002_v38 = vmul.f32 %v2818_v3, %v4251_v43  ;;  %v4292_v2 = vld [vmem:[#allocation5 + $0x8] ss:$0 sm:$0xff] }
 0x128   :  { %v1642_v55 = vadd.f32 %v1578_v6, %v1510_v56  ;;  %v260_v60 = vmul.f32 %v2742_v30, %v4119_v44  ;;  %v392_v40 = vmul.f32 %v2749_v34, %v4247_v12  ;;  %v511_v63 = vrot.slane %v4247_v12, 1 }
 0x129   :  { %v1347_v20 = vadd.f32 %v1283_v4, %v1034_v45  ;;  %v802_v46 = vadd.f32 %v738_v23, %v487_v39  ;;  %v547_v51 = vrot.slane %v4261_v32, 1  ;;  %v4274_v26 = vsel %vm1185_vm1, %v1143_v33, %v1179_v57  ;;  %v4286_v4 = vld [vmem:[#allocation2 + $0x2e8] sm:$0xff]  ;;  %v4300_v45 = vld [vmem:[#allocation2 + $0x2f0] sm:$0xff] }
 0x12a   :  { %2538 = vmatprep.mubr.msk.f32.mxu1 %vm1658_vm2, %v1642_v55  ;;  %v1315_v35 = vmul.f32 %v2846_v48, %v4018_v36  ;;  %v324_v6 = vadd.f32 %v260_v60, %v192_v14  ;;  %v707_v37 = vmul.f32 %v2806_v61, %v4028_v25  ;;  %v1447_v19 = vmul.f32 %v2851_v49, %v4146_v41 }
 0x12b   :  { %v1479_v7 = vadd.f32 %v1415_v47, %v1347_v20  ;;  %v934_v42 = vadd.f32 %v870_v27, %v802_v46  ;;  %v4284_v53 = vsel %vm608_vm0, %v511_v63, %v547_v51  ;;  %v839_v8 = vmul.f32 %v2809_v62, %v4156_v21 }
 0x12c   :  { %v456_v33 = vadd.f32 %v392_v40, %v324_v6  ;;  %v1090_v36 = vrot.slane %v4247_v12, 2  ;;  %v1126_v11 = vrot.slane %v4261_v32, 2  ;;  %v1579_v23 = vmul.f32 %v4292_v2, %v4274_v26 }
 0x12d   :  { %v1611_v25 = vadd.f32 %v1547_v22, %v1479_v7  ;;  %v1066_v47 = vadd.f32 %v1002_v38, %v934_v42  ;;  %v224_v56 = vmul.f32 %v2739_v29, %v4030_v10  ;;  %v971_v14 = vmul.f32 %v2818_v3, %v4284_v53 }
 0x12e   :  { %v771_v57 = vadd.f32 %v707_v37, %v456_v33  ;;  %v292_v39 = vmul.f32 %v2742_v30, %v4158_v16  ;;  %v424_v22 = vmul.f32 %v2749_v34, %v4286_v4  ;;  %v1284_v55 = vmul.f32 %v2846_v48, %v4055_v54 }
 0x12f   :  { %2491 = vmatmul.mubr.msk.f32.gmra.mxu0 %vm1658_vm2, %v1611_v25  ;;  %v1379_v27 = vadd.f32 %v1315_v35, %v1066_v47  ;;  %v529_v10 = vrot.slane %v4286_v4, 1  ;;  %v565_v38 = vrot.slane %v4300_v45, 1  ;;  %v4313_v40 = vsel %vm1185_vm1, %v1090_v36, %v1126_v11 }
 0x130   :  { %v903_v60 = vadd.f32 %v839_v8, %v771_v57  ;;  %v356_v20 = vadd.f32 %v292_v39, %v224_v56  ;;  %v739_v46 = vmul.f32 %v2806_v61, %v4061_v15  ;;  %v1108_v54 = vrot.slane %v4286_v4, 2  ;;  %v97_v8 = vld [vmem:[#allocation2 + $0x148] sm:$0xff] }
 0x131   :  { %v1511_v63 = vadd.f32 %v1447_v19, %v1379_v27  ;;  %v4319_v35 = vsel %vm608_vm0, %v529_v10, %v565_v38  ;;  %v1144_v6 = vrot.slane %v4300_v45, 2  ;;  %v1416_v7 = vmul.f32 %v2851_v49, %v4183_v0 }
 0x132   :  { %v1035_v37 = vadd.f32 %v971_v14, %v903_v60  ;;  %v488_v42 = vadd.f32 %v424_v22, %v356_v20  ;;  %v871_v33 = vmul.f32 %v2809_v62, %v4189_v24  ;;  %v1548_v15 = vmul.f32 %v4292_v2, %v4313_v40 }
 0x133   :  { %v1643_v36 = vadd.f32 %v1579_v23, %v1511_v63  ;;  %v193_v19 = vmul.f32 %v2739_v29, %v4005_v58  ;;  %v261_v25 = vmul.f32 %v2742_v30, %v4133_v18  ;;  %v1003_v57 = vmul.f32 %v2818_v3, %v4319_v35 }
 0x134   :  { %v1348_v47 = vadd.f32 %v1284_v55, %v1035_v37  ;;  %v803_v56 = vadd.f32 %v739_v46, %v488_v42  ;;  %v393_v14 = vmul.f32 %v2749_v34, %v4261_v32  ;;  %v4342_v23 = vsel %vm1185_vm1, %v1108_v54, %v1144_v6  ;;  %v151_v54 = vld [vmem:[#allocation2 + $0x2f8] sm:$0xff] }
 0x135   :  { %2539 = vmatmul.mubr.msk.f32.gmra.mxu1 %vm1658_vm2, %v1643_v36  ;;  %v325_v58 = vadd.f32 %v261_v25, %v193_v19  ;;  %v583_v39 = vrot.slane %v97_v8, 1  ;;  %v708_v22 = vmul.f32 %v2806_v61, %v4092_v28  ;;  %v1316_v10 = vmul.f32 %v2846_v48, %v4084_v17 }
 0x136   :  { %v1480_v27 = vadd.f32 %v1416_v7, %v1348_v47  ;;  %v935_v55 = vadd.f32 %v871_v33, %v803_v56  ;;  %v1162_v60 = vrot.slane %v97_v8, 2  ;;  %v840_v63 = vmul.f32 %v2809_v62, %v4220_v31 }
 0x137   :  { %v457_v20 = vadd.f32 %v393_v14, %v325_v58  ;;  %v4350_v46 = vsel %vm608_vm0, %v547_v51, %v583_v39  ;;  %v225_v37 = vmul.f32 %v2739_v29, %v4042_v50  ;;  %v1448_v7 = vmul.f32 %v2851_v49, %v4212_v13  ;;  %v4377_v58 = vld [vmem:[#allocation2 + $0x150] sm:$0xff] }
 0x138   :  { %v1612_v42 = vadd.f32 %v1548_v15, %v1480_v27  ;;  %v1067_v28 = vadd.f32 %v1003_v57, %v935_v55  ;;  %v1580_v17 = vmul.f32 %v4292_v2, %v4342_v23  ;;  %v972_v51 = vmul.f32 %v2818_v3, %v4350_v46 }
 0x139   :  { %v772_v33 = vadd.f32 %v708_v22, %v457_v20  ;;  %v293_v8 = vmul.f32 %v2742_v30, %v4170_v9  ;;  %v425_v36 = vmul.f32 %v2749_v34, %v4300_v45  ;;  %v4369_v15 = vsel %vm1185_vm1, %v1126_v11, %v1162_v60 }
 0x13a   :  { %2493 = vmatprep.mubr.msk.f32.mxu0 %vm1658_vm2, %v1612_v42  ;;  %v1380_v50 = vadd.f32 %v1316_v10, %v1067_v28  ;;  %v1285_v19 = vmul.f32 %v2846_v48, %v4111_v5  ;;  %v601_v25 = vrot.slane %v151_v54, 1  ;;  %v1417_v56 = vmul.f32 %v2851_v49, %v4239_v52 }
 0x13b   :  { %v904_v47 = vadd.f32 %v840_v63, %v772_v33  ;;  %v357_v57 = vadd.f32 %v293_v8, %v225_v37  ;;  %v740_v14 = vmul.f32 %v2806_v61, %v4123_v59  ;;  %v1180_v11 = vrot.slane %v151_v54, 2  ;;  %v4391_v63 = vld [vmem:[#allocation2 + $0x158] sm:$0xff] }
 0x13c   :  { %v1512_v39 = vadd.f32 %v1448_v7, %v1380_v50  ;;  %v4381_v22 = vsel %vm608_vm0, %v565_v38, %v601_v25  ;;  %v194_v5 = vmul.f32 %v2739_v29, %v4119_v44  ;;  %v1549_v55 = vmul.f32 %v4292_v2, %v4369_v15  ;;  %v4416_v25 = vld [vmem:[#allocation2 + $0x300] sm:$0xff] }
 0x13d   :  { %v1036_v27 = vadd.f32 %v972_v51, %v904_v47  ;;  %v489_v10 = vadd.f32 %v425_v36, %v357_v57  ;;  %v872_v60 = vmul.f32 %v2809_v62, %v4251_v43  ;;  %v1004_v20 = vmul.f32 %v2818_v3, %v4381_v22 }
 0x13e   :  { %v1644_v59 = vadd.f32 %v1580_v17, %v1512_v39  ;;  %v262_v38 = vmul.f32 %v2742_v30, %v4247_v12  ;;  %v394_v44 = vmul.f32 %v2749_v34, %v4377_v58  ;;  %v512_v42 = vrot.slane %v4377_v58, 1 }
 0x13f   :  { %v1349_v54 = vadd.f32 %v1285_v19, %v1036_v27  ;;  %v804_v37 = vadd.f32 %v740_v14, %v489_v10  ;;  %v548_v28 = vrot.slane %v4391_v63, 1  ;;  %v4404_v7 = vsel %vm1185_vm1, %v1144_v6, %v1180_v11  ;;  %v4428_v27 = vld [vmem:[#allocation2 + $0x308] sm:$0xff] }
 0x140   :  { %2541 = vmatprep.mubr.msk.f32.mxu1 %vm1658_vm2, %v1644_v59  ;;  %v1317_v17 = vmul.f32 %v2846_v48, %v4146_v41  ;;  %v326_v33 = vadd.f32 %v262_v38, %v194_v5  ;;  %v709_v51 = vmul.f32 %v2806_v61, %v4156_v21  ;;  %v1449_v50 = vmul.f32 %v2851_v49, %v4274_v26 }
 0x141   :  { %v1481_v8 = vadd.f32 %v1417_v56, %v1349_v54  ;;  %v936_v36 = vadd.f32 %v872_v60, %v804_v37  ;;  %v4414_v19 = vsel %vm608_vm0, %v512_v42, %v548_v28  ;;  %v841_v47 = vmul.f32 %v2809_v62, %v4284_v53 }
 0x142   :  { %v458_v6 = vadd.f32 %v394_v44, %v326_v33  ;;  %v1091_v41 = vrot.slane %v4377_v58, 2  ;;  %v1127_v57 = vrot.slane %v4391_v63, 2  ;;  %v1581_v14 = vmul.f32 %v4292_v2, %v4404_v7 }
 0x143   :  { %v1613_v21 = vadd.f32 %v1549_v55, %v1481_v8  ;;  %v1068_v56 = vadd.f32 %v1004_v20, %v936_v36  ;;  %v226_v39 = vmul.f32 %v2739_v29, %v4158_v16  ;;  %v973_v5 = vmul.f32 %v2818_v3, %v4414_v19 }
 0x144   :  { %v773_v11 = vadd.f32 %v709_v51, %v458_v6  ;;  %v294_v10 = vmul.f32 %v2742_v30, %v4286_v4  ;;  %v426_v60 = vmul.f32 %v2749_v34, %v4416_v25  ;;  %v1286_v59 = vmul.f32 %v2846_v48, %v4183_v0 }
 0x145   :  { %2494 = vmatmul.mubr.msk.f32.gmra.mxu0 %vm1658_vm2, %v1613_v21  ;;  %v1381_v55 = vadd.f32 %v1317_v17, %v1068_v56  ;;  %v530_v16 = vrot.slane %v4416_v25, 1  ;;  %v566_v20 = vrot.slane %v4428_v27, 1  ;;  %v4441_v44 = vsel %vm1185_vm1, %v1091_v41, %v1127_v57 }
 0x146   :  { %v905_v38 = vadd.f32 %v841_v47, %v773_v11  ;;  %v358_v54 = vadd.f32 %v294_v10, %v226_v39  ;;  %v741_v37 = vmul.f32 %v2806_v61, %v4189_v24  ;;  %v1109_v0 = vrot.slane %v4416_v25, 2  ;;  %v100_v47 = vld [vmem:[#allocation2 + $0x160] sm:$0xff] }
 0x147   :  { %v1513_v42 = vadd.f32 %v1449_v50, %v1381_v55  ;;  %v4447_v17 = vsel %vm608_vm0, %v530_v16, %v566_v20  ;;  %v1145_v33 = vrot.slane %v4428_v27, 2  ;;  %v1418_v8 = vmul.f32 %v2851_v49, %v4313_v40 }
 0x148   :  { %v1037_v51 = vadd.f32 %v973_v5, %v905_v38  ;;  %v490_v36 = vadd.f32 %v426_v60, %v358_v54  ;;  %v873_v6 = vmul.f32 %v2809_v62, %v4319_v35  ;;  %v1550_v24 = vmul.f32 %v4292_v2, %v4441_v44 }
 0x149   :  { %v1645_v41 = vadd.f32 %v1581_v14, %v1513_v42  ;;  %v195_v50 = vmul.f32 %v2739_v29, %v4133_v18  ;;  %v263_v21 = vmul.f32 %v2742_v30, %v4261_v32  ;;  %v1005_v11 = vmul.f32 %v2818_v3, %v4447_v17 }
 0x14a   :  { %v1350_v56 = vadd.f32 %v1286_v59, %v1037_v51  ;;  %v805_v39 = vadd.f32 %v741_v37, %v490_v36  ;;  %v395_v5 = vmul.f32 %v2749_v34, %v4391_v63  ;;  %v4470_v14 = vsel %vm1185_vm1, %v1109_v0, %v1145_v33  ;;  %v154_v0 = vld [vmem:[#allocation2 + $0x310] sm:$0xff] }
 0x14b   :  { %2542 = vmatmul.mubr.msk.f32.gmra.mxu1 %vm1658_vm2, %v1645_v41  ;;  %v327_v18 = vadd.f32 %v263_v21, %v195_v50  ;;  %v584_v10 = vrot.slane %v100_v47, 1  ;;  %v710_v60 = vmul.f32 %v2806_v61, %v4220_v31  ;;  %v1318_v16 = vmul.f32 %v2846_v48, %v4212_v13 }
 0x14c   :  { %v1482_v55 = vadd.f32 %v1418_v8, %v1350_v56  ;;  %v937_v59 = vadd.f32 %v873_v6, %v805_v39  ;;  %v1163_v38 = vrot.slane %v100_v47, 2  ;;  %v842_v42 = vmul.f32 %v2809_v62, %v4350_v46 }
 0x14d   :  { %v459_v54 = vadd.f32 %v395_v5, %v327_v18  ;;  %v4478_v37 = vsel %vm608_vm0, %v548_v28, %v584_v10  ;;  %v227_v51 = vmul.f32 %v2739_v29, %v4170_v9  ;;  %v1450_v8 = vmul.f32 %v2851_v49, %v4342_v23  ;;  %v4505_v18 = vld [vmem:[#allocation2 + $0x168] sm:$0xff] }
 0x14e   :  { %v1614_v36 = vadd.f32 %v1550_v24, %v1482_v55  ;;  %v1069_v31 = vadd.f32 %v1005_v11, %v937_v59  ;;  %v1582_v13 = vmul.f32 %v4292_v2, %v4470_v14  ;;  %v974_v28 = vmul.f32 %v2818_v3, %v4478_v37 }
 0x14f   :  { %v774_v6 = vadd.f32 %v710_v60, %v459_v54  ;;  %v295_v47 = vmul.f32 %v2742_v30, %v4300_v45  ;;  %v427_v41 = vmul.f32 %v2749_v34, %v4428_v27  ;;  %v4497_v24 = vsel %vm1185_vm1, %v1127_v57, %v1163_v38 }
 0x150   :  { %2496 = vmatprep.mubr.msk.f32.mxu0 %vm1658_vm2, %v1614_v36  ;;  %v1382_v9 = vadd.f32 %v1318_v16, %v1069_v31  ;;  %v1287_v50 = vmul.f32 %v2846_v48, %v4239_v52  ;;  %v602_v21 = vrot.slane %v154_v0, 1  ;;  %v1419_v39 = vmul.f32 %v2851_v49, %v4369_v15 }
 0x151   :  { %v906_v56 = vadd.f32 %v842_v42, %v774_v6  ;;  %v359_v11 = vadd.f32 %v295_v47, %v227_v51  ;;  %v742_v5 = vmul.f32 %v2806_v61, %v4251_v43  ;;  %v1181_v57 = vrot.slane %v154_v0, 2  ;;  %v4519_v42 = vld [vmem:[#allocation2 + $0x170] sm:$0xff] }
 0x152   :  { %v1514_v10 = vadd.f32 %v1450_v8, %v1382_v9  ;;  %v4509_v60 = vsel %vm608_vm0, %v566_v20, %v602_v21  ;;  %v196_v52 = vmul.f32 %v2739_v29, %v4247_v12  ;;  %v1551_v59 = vmul.f32 %v4292_v2, %v4497_v24  ;;  %v4544_v21 = vld [vmem:[#allocation2 + $0x318] sm:$0xff] }
 0x153   :  { %v1038_v55 = vadd.f32 %v974_v28, %v906_v56  ;;  %v491_v16 = vadd.f32 %v427_v41, %v359_v11  ;;  %v874_v38 = vmul.f32 %v2809_v62, %v4381_v22  ;;  %v1006_v54 = vmul.f32 %v2818_v3, %v4509_v60 }
 0x154   :  { %v1646_v43 = vadd.f32 %v1582_v13, %v1514_v10  ;;  %v264_v20 = vmul.f32 %v2742_v30, %v4377_v58  ;;  %v396_v12 = vmul.f32 %v2749_v34, %v4505_v18  ;;  %v513_v36 = vrot.slane %v4505_v18, 1 }
 0x155   :  { %v1351_v0 = vadd.f32 %v1287_v50, %v1038_v55  ;;  %v806_v51 = vadd.f32 %v742_v5, %v491_v16  ;;  %v549_v31 = vrot.slane %v4519_v42, 1  ;;  %v4532_v8 = vsel %vm1185_vm1, %v1145_v33, %v1181_v57  ;;  %v4556_v55 = vld [vmem:[#allocation2 + $0x320] sm:$0xff] }
 0x156   :  { %2544 = vmatprep.mubr.msk.f32.mxu1 %vm1658_vm2, %v1646_v43  ;;  %v1319_v13 = vmul.f32 %v2846_v48, %v4274_v26  ;;  %v328_v6 = vadd.f32 %v264_v20, %v196_v52  ;;  %v711_v28 = vmul.f32 %v2806_v61, %v4284_v53  ;;  %v1451_v9 = vmul.f32 %v2851_v49, %v4404_v7 }
 0x157   :  { %v1483_v47 = vadd.f32 %v1419_v39, %v1351_v0  ;;  %v938_v41 = vadd.f32 %v874_v38, %v806_v51  ;;  %v4542_v50 = vsel %vm608_vm0, %v513_v36, %v549_v31  ;;  %v843_v56 = vmul.f32 %v2809_v62, %v4414_v19 }
 0x158   :  { %v460_v33 = vadd.f32 %v396_v12, %v328_v6  ;;  %v1092_v26 = vrot.slane %v4505_v18, 2  ;;  %v1128_v11 = vrot.slane %v4519_v42, 2  ;;  %v1583_v5 = vmul.f32 %v4292_v2, %v4532_v8 }
 0x159   :  { %v1615_v53 = vadd.f32 %v1551_v59, %v1483_v47  ;;  %v1070_v39 = vadd.f32 %v1006_v54, %v938_v41  ;;  %v228_v10 = vmul.f32 %v2739_v29, %v4286_v4  ;;  %v975_v52 = vmul.f32 %v2818_v3, %v4542_v50 }
 0x15a   :  { %v775_v57 = vadd.f32 %v711_v28, %v460_v33  ;;  %v296_v16 = vmul.f32 %v2742_v30, %v4416_v25  ;;  %v428_v38 = vmul.f32 %v2749_v34, %v4544_v21  ;;  %v1288_v43 = vmul.f32 %v2846_v48, %v4313_v40 }
 0x15b   :  { %2497 = vmatmul.mubr.msk.f32.gmra.mxu0 %vm1658_vm2, %v1615_v53  ;;  %v1383_v59 = vadd.f32 %v1319_v13, %v1070_v39  ;;  %v531_v4 = vrot.slane %v4544_v21, 1  ;;  %v567_v54 = vrot.slane %v4556_v55, 1  ;;  %v4569_v12 = vsel %vm1185_vm1, %v1092_v26, %v1128_v11 }
 0x15c   :  { %v907_v20 = vadd.f32 %v843_v56, %v775_v57  ;;  %v360_v0 = vadd.f32 %v296_v16, %v228_v10  ;;  %v743_v51 = vmul.f32 %v2806_v61, %v4319_v35  ;;  %v1110_v40 = vrot.slane %v4544_v21, 2  ;;  %v103_v56 = vld [vmem:[#allocation2 + $0x178] sm:$0xff] }
 0x15d   :  { %v1515_v36 = vadd.f32 %v1451_v9, %v1383_v59  ;;  %v4575_v13 = vsel %vm608_vm0, %v531_v4, %v567_v54  ;;  %v1146_v6 = vrot.slane %v4556_v55, 2  ;;  %v1420_v47 = vmul.f32 %v2851_v49, %v4441_v44 }
 0x15e   :  { %v1039_v28 = vadd.f32 %v975_v52, %v907_v20  ;;  %v492_v41 = vadd.f32 %v428_v38, %v360_v0  ;;  %v875_v33 = vmul.f32 %v2809_v62, %v4447_v17  ;;  %v1552_v35 = vmul.f32 %v4292_v2, %v4569_v12 }
 0x15f   :  { %v1647_v26 = vadd.f32 %v1583_v5, %v1515_v36  ;;  %v197_v9 = vmul.f32 %v2739_v29, %v4261_v32  ;;  %v265_v53 = vmul.f32 %v2742_v30, %v4391_v63  ;;  %v1007_v57 = vmul.f32 %v2818_v3, %v4575_v13 }
 0x160   :  { %v1352_v39 = vadd.f32 %v1288_v43, %v1039_v28  ;;  %v807_v10 = vadd.f32 %v743_v51, %v492_v41  ;;  %v397_v52 = vmul.f32 %v2749_v34, %v4519_v42  ;;  %v4596_v5 = vsel %vm1185_vm1, %v1110_v40, %v1146_v6  ;;  %v157_v40 = vld [vmem:[#allocation2 + $0x328] sm:$0xff] }
 0x161   :  { %2545 = vmatmul.mubr.msk.f32.gmra.mxu1 %vm1658_vm2, %v1647_v26  ;;  %v329_v16 = vadd.f32 %v265_v53, %v197_v9  ;;  %v585_v38 = vrot.slane %v103_v56, 1  ;;  %v712_v32 = vmul.f32 %v2806_v61, %v4350_v46  ;;  %v1320_v4 = vmul.f32 %v2846_v48, %v4342_v23 }
 0x162   :  { %v1484_v59 = vadd.f32 %v1420_v47, %v1352_v39  ;;  %v939_v43 = vadd.f32 %v875_v33, %v807_v10  ;;  %v1164_v20 = vrot.slane %v103_v56, 2  ;;  %v844_v36 = vmul.f32 %v2809_v62, %v4478_v37 }
 0x163   :  { %v461_v0 = vadd.f32 %v397_v52, %v329_v16  ;;  %v4604_v51 = vsel %vm608_vm0, %v549_v31, %v585_v38  ;;  %v229_v28 = vmul.f32 %v2739_v29, %v4300_v45  ;;  %v1452_v47 = vmul.f32 %v2851_v49, %v4470_v14  ;;  %v4629_v16 = vpop.f32.mrf.mxu0  ;;  %v4631_v38 = vpop.f32.mrf.mxu1 }
 0x164   :  { %v1616_v41 = vadd.f32 %v1552_v35, %v1484_v59  ;;  %v1071_v46 = vadd.f32 %v1007_v57, %v939_v43  ;;  %v1584_v23 = vmul.f32 %v4292_v2, %v4596_v5  ;;  %v976_v31 = vmul.f32 %v2818_v3, %v4604_v51  ;;  %2238 = vst.msk [vmem:[#allocation8 + $0x8] sm:$0xff] %vm2236_vm3, %v4629_v16 }
 0x165   :  { %v776_v33 = vadd.f32 %v712_v32, %v461_v0  ;;  %v297_v56 = vmul.f32 %v2742_v30, %v4428_v27  ;;  %v429_v26 = vmul.f32 %v2749_v34, %v4556_v55  ;;  %v4623_v35 = vsel %vm1185_vm1, %v1128_v11, %v1164_v20  ;;  %v104_v11 = vld [vmem:[#allocation2 + $0x180] sm:$0xff]  ;;  %2270 = vst.msk [vmem:[#allocation8 + $0x108] sm:$0xff] %vm2236_vm3, %v4631_v38 }
 0x166   :  { %2499 = vmatprep.mubr.msk.f32.mxu0 %vm1658_vm2, %v1616_v41  ;;  %v1384_v45 = vadd.f32 %v1320_v4, %v1071_v46  ;;  %v1289_v9 = vmul.f32 %v2846_v48, %v4369_v15  ;;  %v603_v53 = vrot.slane %v157_v40, 1  ;;  %v744_v57 = vmul.f32 %v2806_v61, %v4381_v22  ;;  %v4653_v46 = vld [vmem:[#allocation2 + $0x188] sm:$0xff] }
 0x167   :  { %v908_v39 = vadd.f32 %v844_v36, %v776_v33  ;;  %v361_v10 = vadd.f32 %v297_v56, %v229_v28  ;;  %v1182_v52 = vrot.slane %v157_v40, 2  ;;  %v198_v15 = vmul.f32 %v2739_v29, %v4377_v58  ;;  %v4658_v33 = vpop.f32.mrf.mxu1 }
 0x168   :  { %v1516_v32 = vadd.f32 %v1452_v47, %v1384_v45  ;;  %v4635_v59 = vsel %vm608_vm0, %v567_v54, %v603_v53  ;;  %v1421_v4 = vmul.f32 %v2851_v49, %v4497_v24  ;;  %v876_v22 = vmul.f32 %v2809_v62, %v4509_v60  ;;  %2269 = vst.msk [vmem:[#allocation8 + $0x100] sm:$0xff] %vm2236_vm3, %v4658_v33 }
 0x169   :  { %v1040_v43 = vadd.f32 %v976_v31, %v908_v39  ;;  %v493_v20 = vadd.f32 %v429_v26, %v361_v10  ;;  %v1553_v36 = vmul.f32 %v4292_v2, %v4623_v35  ;;  %v1008_v54 = vmul.f32 %v2818_v3, %v4635_v59 }
 0x16a   :  { %v1648_v0 = vadd.f32 %v1584_v23, %v1516_v32  ;;  %v266_v40 = vmul.f32 %v2742_v30, %v4505_v18  ;;  %v4651_v41 = vsel %vm1185_vm1, %v1146_v6, %v1182_v52  ;;  %v398_v47 = vmul.f32 %v2749_v34, %v104_v11  ;;  %v4656_v23 = vpop.f32.mrf.mxu0 }
 0x16b   :  { %v1353_v28 = vadd.f32 %v1289_v9, %v1040_v43  ;;  %v808_v58 = vadd.f32 %v744_v57, %v493_v20  ;;  %v514_v56 = vrot.slane %v104_v11, 1  ;;  %v5035_v26 = vrot.slane %v4653_v46, 1  ;;  %2237 = vst.msk [vmem:[#allocation8] sm:$0xff] %vm2236_vm3, %v4656_v23 }
 0x16c   :  { %2547 = vmatprep.mubr.msk.f32.mxu1 %vm1658_vm2, %v1648_v0  ;;  %v330_v31 = vadd.f32 %v266_v40, %v198_v15  ;;  %v713_v45 = vmul.f32 %v2806_v61, %v4414_v19  ;;  %v1321_v53 = vmul.f32 %v2846_v48, %v4404_v7  ;;  %v1093_v39 = vrot.slane %v104_v11, 2  ;;  %v4679_v20 = vpop.f32.mrf.mxu0 }
 0x16d   :  { %v1485_v9 = vadd.f32 %v1421_v4, %v1353_v28  ;;  %v940_v6 = vadd.f32 %v876_v22, %v808_v58  ;;  %v4670_v57 = vsel %vm608_vm0, %v514_v56, %v5035_v26  ;;  %v845_v52 = vmul.f32 %v2809_v62, %v4542_v50  ;;  %v158_v4 = vld [vmem:[#allocation2 + $0x330] sm:$0xff]  ;;  %5052 = vst [vmem:[#allocation12_spill] sm:$0xff] %v4679_v20  ;;  %v4681_v22 = vpop.f32.mrf.mxu1 }
 0x16e   :  { %v462_v10 = vadd.f32 %v398_v47, %v330_v31  ;;  %v5034_v32 = vrot.slane %v4653_v46, 2  ;;  %v1453_v43 = vmul.f32 %v2851_v49, %v4532_v8  ;;  %v1585_v7 = vmul.f32 %v4292_v2, %v4651_v41  ;;  %5053 = vst [vmem:[#allocation13_spill] sm:$0xff] %v4681_v22  ;;  %v106_v26 = vld [vmem:[#allocation2 + $0x190] sm:$0xff] }
 0x16f   :  { %v1617_v15 = vadd.f32 %v1553_v36, %v1485_v9  ;;  %v1072_v19 = vadd.f32 %v1008_v54, %v940_v6  ;;  %v977_v40 = vmul.f32 %v2818_v3, %v4670_v57  ;;  %v230_v28 = vmul.f32 %v2739_v29, %v4416_v25  ;;  %v4700_v25 = vld [vmem:[#allocation2 + $0x338] sm:$0xff] }
 0x170   :  { %v777_v0 = vadd.f32 %v713_v45, %v462_v10  ;;  %v298_v36 = vmul.f32 %v2742_v30, %v4544_v21  ;;  %v4694_v58 = vsel %vm1185_vm1, %v1093_v39, %v5034_v32  ;;  %v1290_v47 = vmul.f32 %v2846_v48, %v4441_v44  ;;  %v4708_v44 = vpop.f32.mrf.mxu0 }
 0x171   :  { %2500 = vmatmul.mubr.msk.f32.gmra.mxu0 %vm1658_vm2, %v1617_v15  ;;  %v1385_v54 = vadd.f32 %v1321_v53, %v1072_v19  ;;  %v1422_v31 = vmul.f32 %v2851_v49, %v4569_v12  ;;  %v430_v9 = vmul.f32 %v2749_v34, %v158_v4  ;;  %v532_v6 = vrot.slane %v158_v4, 1  ;;  %5054 = vst [vmem:[#allocation14_spill] sm:$0xff] %v4708_v44  ;;  %v4710_v19 = vpop.f32.mrf.mxu1 }
 0x172   :  { %v909_v56 = vadd.f32 %v845_v52, %v777_v0  ;;  %v362_v45 = vadd.f32 %v298_v36, %v230_v28  ;;  %v568_v10 = vrot.slane %v4700_v25, 1  ;;  %v745_v39 = vmul.f32 %v2806_v61, %v4447_v17  ;;  %5055 = vst [vmem:[#allocation15_spill] sm:$0xff] %v4710_v19 }
 0x173   :  { %v1517_v53 = vadd.f32 %v1453_v43, %v1385_v54  ;;  %v877_v15 = vmul.f32 %v2809_v62, %v4575_v13  ;;  %v1111_v32 = vrot.slane %v158_v4, 2  ;;  %v5036_v28 = vrot.slane %v4700_v25, 2 }
 0x174   :  { %v1041_v52 = vadd.f32 %v977_v40, %v909_v56  ;;  %v494_v0 = vadd.f32 %v430_v9, %v362_v45  ;;  %v268_v43 = vmul.f32 %v2742_v30, %v104_v11  ;;  %v4716_v54 = vmul.f32 %v2742_v30, %v4653_v46 }
 0x175   :  { %v1649_v36 = vadd.f32 %v1585_v7, %v1517_v53  ;;  %v4720_v17 = vsel %vm608_vm0, %v532_v6, %v568_v10  ;;  %v1554_v40 = vmul.f32 %v4292_v2, %v4694_v58  ;;  %v1322_v11 = vmul.f32 %v2846_v48, %v4470_v14  ;;  %v4735_v6 = vpop.f32.mrf.mxu0  ;;  %v4737_v53 = vpop.f32.mrf.mxu1 }
 0x176   :  { %v1354_v44 = vadd.f32 %v1290_v47, %v1041_v52  ;;  %v809_v56 = vadd.f32 %v745_v39, %v494_v0  ;;  %v1009_v45 = vmul.f32 %v2818_v3, %v4720_v17  ;;  %v199_v7 = vmul.f32 %v2739_v29, %v4391_v63  ;;  %5056 = vst [vmem:[#allocation16_spill] sm:$0xff] %v4735_v6 }
 0x177   :  { %2548 = vmatmul.mubr.msk.f32.gmra.mxu1 %vm1658_vm2, %v1649_v36  ;;  %v267_v9 = vmul.f32 %v2742_v30, %v4519_v42  ;;  %v399_v47 = vmul.f32 %v2749_v34, %v4653_v46  ;;  %v4743_v14 = vsel %vm1185_vm1, %v1111_v32, %v5036_v28  ;;  %v586_v0 = vrot.slane %v106_v26, 1  ;;  %2274 = vst.msk [vmem:[#allocation8 + $0x128] sm:$0xff] %vm2236_vm3, %v4737_v53 }
 0x178   :  { %v1486_v39 = vadd.f32 %v1422_v31, %v1354_v44  ;;  %v941_v52 = vadd.f32 %v877_v15, %v809_v56  ;;  %v4746_v63 = vmul.f32 %v2742_v30, %v158_v4  ;;  %v714_v19 = vmul.f32 %v2806_v61, %v4478_v37  ;;  %v160_v44 = vld [vmem:[#allocation2 + $0x340] sm:$0xff] }
 0x179   :  { %v331_v36 = vadd.f32 %v267_v9, %v199_v7  ;;  %v1165_v22 = vrot.slane %v106_v26, 2  ;;  %v1454_v31 = vmul.f32 %v2851_v49, %v4596_v5  ;;  %v5057_v15 = vrot.slane %v4653_v46, 1 }
 0x17a   :  { %v1618_v6 = vadd.f32 %v1554_v40, %v1486_v39  ;;  %v1073_v20 = vadd.f32 %v1009_v45, %v941_v52  ;;  %v1586_v4 = vmul.f32 %v4292_v2, %v4743_v14  ;;  %v846_v37 = vmul.f32 %v2809_v62, %v4604_v51  ;;  %v4764_v40 = vpop.f32.mrf.mxu0  ;;  %v4766_v45 = vpop.f32.mrf.mxu1 }
 0x17b   :  { %v4756_v32 = vsel %vm608_vm0, %v5057_v15, %v586_v0  ;;  %v463_v56 = vadd.f32 %v399_v47, %v331_v36  ;;  %v231_v26 = vmul.f32 %v2739_v29, %v4428_v27  ;;  %v5058_v9 = vrot.slane %v4653_v46, 2  ;;  %v107_v15 = vld [vmem:[#allocation2 + $0x198] sm:$0xff]  ;;  %2241 = vst.msk [vmem:[#allocation8 + $0x20] sm:$0xff] %vm2236_vm3, %v4764_v40  ;;  %2273 = vst.msk [vmem:[#allocation8 + $0x120] sm:$0xff] %vm2236_vm3, %v4766_v45 }
 0x17c   :  { %2502 = vmatprep.mubr.msk.f32.mxu0 %vm1658_vm2, %v1618_v6  ;;  %v1386_v7 = vadd.f32 %v1322_v11, %v1073_v20  ;;  %v299_v47 = vmul.f32 %v2742_v30, %v4556_v55  ;;  %v431_v52 = vmul.f32 %v2749_v34, %v4700_v25  ;;  %v978_v0 = vmul.f32 %v2818_v3, %v4756_v32 }
 0x17d   :  { %v4773_v39 = vsel %vm1185_vm1, %v5058_v9, %v1165_v22  ;;  %v778_v27 = vadd.f32 %v714_v19, %v463_v56  ;;  %v1291_v6 = vmul.f32 %v2846_v48, %v4497_v24  ;;  %v604_v20 = vrot.slane %v160_v44, 1  ;;  %v5067_v16 = vld [vmem:[#allocation16_spill] sm:$0xff] }
 0x17e   :  { %5059 = vst [vmem:[#allocation17_spill] sm:$0xff] %v4773_v39  ;;  %v1518_v11 = vadd.f32 %v1454_v31, %v1386_v7  ;;  %v1423_v46 = vmul.f32 %v2851_v49, %v4623_v35  ;;  %v363_v22 = vadd.f32 %v299_v47, %v231_v26  ;;  %v746_v36 = vmul.f32 %v2806_v61, %v4509_v60  ;;  %v4795_v31 = vpop.f32.mrf.mxu0  ;;  %v4797_v7 = vpop.f32.mrf.mxu1 }
 0x17f   :  { %v910_v9 = vadd.f32 %v846_v37, %v778_v27  ;;  %v1555_v19 = vmul.f32 %v4292_v2, %v4773_v39  ;;  %v4791_v56 = vsel %vm608_vm0, %v568_v10, %v604_v20  ;;  %v200_v24 = vmul.f32 %v2739_v29, %v4505_v18  ;;  %v4803_v39 = vld [vmem:[#allocation2 + $0x1a0] sm:$0xff]  ;;  %2242 = vst.msk [vmem:[#allocation8 + $0x28] sm:$0xff] %vm2236_vm3, %v5067_v16 }
 0x180   :  { %v1650_v26 = vadd.f32 %v1586_v4, %v1518_v11  ;;  %v495_v47 = vadd.f32 %v431_v52, %v363_v22  ;;  %v878_v60 = vmul.f32 %v2809_v62, %v4635_v59  ;;  %v1183_v37 = vrot.slane %v160_v44, 2  ;;  %2244 = vst.msk [vmem:[#allocation8 + $0x38] sm:$0xff] %vm2236_vm3, %v4795_v31  ;;  %2276 = vst.msk [vmem:[#allocation8 + $0x138] sm:$0xff] %vm2236_vm3, %v4797_v7  ;;  %v2572_v7 = vld [vmem:[#allocation5 + $0x8] ss:$0 sm:$0xff] }
 0x181   :  { %v1042_v27 = vadd.f32 %v978_v0, %v910_v9  ;;  %v1323_v28 = vmul.f32 %v2846_v48, %v4532_v8  ;;  %v332_v10 = vadd.f32 %v268_v43, %v200_v24  ;;  %v400_v20 = vmul.f32 %v2749_v34, %v107_v15  ;;  %v4814_v43 = vpop.f32.mrf.mxu0  ;;  %v4816_v9 = vpop.f32.mrf.mxu1 }
 0x182   :  { %2550 = vmatprep.mubr.msk.f32.mxu1 %vm1658_vm2, %v1650_v26  ;;  %v810_v18 = vadd.f32 %v746_v36, %v495_v47  ;;  %v1010_v4 = vmul.f32 %v2818_v3, %v4791_v56  ;;  %v515_v52 = vrot.slane %v107_v15, 1  ;;  %v5039_v11 = vrot.slane %v4803_v39, 1  ;;  %v161_v47 = vld [vmem:[#allocation2 + $0x348] sm:$0xff]  ;;  %2243 = vst.msk [vmem:[#allocation8 + $0x30] sm:$0xff] %vm2236_vm3, %v4814_v43  ;;  %2275 = vst.msk [vmem:[#allocation8 + $0x130] sm:$0xff] %vm2236_vm3, %v4816_v9 }
 0x183   :  { %v1355_v22 = vadd.f32 %v1291_v6, %v1042_v27  ;;  %v464_v44 = vadd.f32 %v400_v20, %v332_v10  ;;  %v715_v0 = vmul.f32 %v2806_v61, %v4542_v50  ;;  %v847_v8 = vmul.f32 %v2809_v62, %v4670_v57 }
 0x184   :  { %v942_v24 = vadd.f32 %v878_v60, %v810_v18  ;;  %v662_v36 = vsel %vm608_vm0, %v515_v52, %v5039_v11  ;;  %v1094_v26 = vrot.slane %v107_v15, 2  ;;  %v5038_v6 = vrot.slane %v4803_v39, 2 }
 0x185   :  { %v1487_v27 = vadd.f32 %v1423_v46, %v1355_v22  ;;  %v5060_v50 = vrot.slane %v4700_v25, 2  ;;  %v779_v10 = vadd.f32 %v715_v0, %v464_v44  ;;  %v979_v20 = vmul.f32 %v2818_v3, %v662_v36  ;;  %v4841_v0 = vpop.f32.mrf.mxu0  ;;  %v4847_v36 = vld [vmem:[#allocation2 + $0x350] sm:$0xff]  ;;  %v5068_v23 = vld [vmem:[#allocation17_spill] sm:$0xff] }
 0x186   :  { %v1074_v60 = vadd.f32 %v1010_v4, %v942_v24  ;;  %v1455_v18 = vmul.f32 %v2851_v49, %v4651_v41  ;;  %v1292_v15 = vmul.f32 %v2846_v48, %v4569_v12  ;;  %v232_v52 = vmul.f32 %v2739_v29, %v4544_v21  ;;  %v4843_v4 = vpop.f32.mrf.mxu1  ;;  %2246 = vst.msk [vmem:[#allocation8 + $0x48] sm:$0xff] %vm2236_vm3, %v4841_v0 }
 0x187   :  { %v4827_v57 = vsel %vm1185_vm1, %v5060_v50, %v1183_v37  ;;  %v1619_v46 = vadd.f32 %v1555_v19, %v1487_v27  ;;  %v911_v22 = vadd.f32 %v847_v8, %v779_v10  ;;  %v1239_v37 = vsel %vm1185_vm1, %v1094_v26, %v5038_v6  ;;  %2278 = vst.msk [vmem:[#allocation8 + $0x148] sm:$0xff] %vm2236_vm3, %v4843_v4 }
 0x188   :  { %v432_v44 = vmul.f32 %v2749_v34, %v161_v47  ;;  %v1387_v24 = vadd.f32 %v1323_v28, %v1074_v60  ;;  %v1587_v12 = vmul.f32 %v4292_v2, %v4827_v57  ;;  %v364_v21 = vadd.f32 %v4746_v63, %v232_v52  ;;  %v109_v63 = vld [vmem:[#allocation2 + $0x1a8] sm:$0xff]  ;;  %v4864_v11 = vpop.f32.mrf.mxu1 }
 0x189   :  { %v533_v19 = vrot.slane %v161_v47, 1  ;;  %2503 = vmatmul.mubr.msk.f32.gmra.mxu0 %vm1658_vm2, %v1619_v46  ;;  %v1043_v8 = vadd.f32 %v979_v20, %v911_v22  ;;  %v1424_v26 = vmul.f32 %v2851_v49, %v4694_v58  ;;  %v569_v27 = vrot.slane %v4847_v36, 1  ;;  %v4862_v22 = vpop.f32.mrf.mxu0  ;;  %2277 = vst.msk [vmem:[#allocation8 + $0x140] sm:$0xff] %vm2236_vm3, %v4864_v11 }
 0x18a   :  { %v747_v50 = vmul.f32 %v2806_v61, %v4575_v13  ;;  %v1519_v28 = vadd.f32 %v1455_v18, %v1387_v24  ;;  %v1556_v10 = vmul.f32 %v4292_v2, %v1239_v37  ;;  %v496_v60 = vadd.f32 %v432_v44, %v364_v21  ;;  %2245 = vst.msk [vmem:[#allocation8 + $0x40] sm:$0xff] %vm2236_vm3, %v4862_v22 }
 0x18b   :  { %v879_v6 = vmul.f32 %v2809_v62, %v4720_v17  ;;  %v1356_v52 = vadd.f32 %v1292_v15, %v1043_v8  ;;  %v680_v20 = vsel %vm608_vm0, %v533_v19, %v569_v27  ;;  %v1112_v46 = vrot.slane %v161_v47, 2  ;;  %v4876_v19 = vld [vmem:[#allocation2 + $0x358] sm:$0xff] }
 0x18c   :  { %v1148_v58 = vrot.slane %v4847_v36, 2  ;;  %v1651_v13 = vadd.f32 %v1587_v12, %v1519_v28  ;;  %v811_v18 = vadd.f32 %v747_v50, %v496_v60  ;;  %v1011_v37 = vmul.f32 %v2818_v3, %v680_v20 }
 0x18d   :  { %v401_v44 = vmul.f32 %v2749_v34, %v4803_v39  ;;  %v1488_v17 = vadd.f32 %v1424_v26, %v1356_v52  ;;  %v201_v15 = vmul.f32 %v2739_v29, %v4519_v42  ;;  %v587_v24 = vrot.slane %v109_v63, 1 }
 0x18e   :  { %v301_v47 = vmul.f32 %v2742_v30, %v4700_v25  ;;  %2551 = vmatmul.mubr.msk.f32.gmra.mxu1 %vm1658_vm2, %v1651_v13  ;;  %v943_v21 = vadd.f32 %v879_v6, %v811_v18  ;;  %v1324_v12 = vmul.f32 %v2846_v48, %v4596_v5  ;;  %v1257_v26 = vsel %vm1185_vm1, %v1112_v46, %v1148_v58  ;;  %v2477_v30 = vpop.f32.mrf.mxu0  ;;  %v2525_v25 = vpop.f32.mrf.mxu1 }
 0x18f   :  { %v1620_v8 = vadd.f32 %v1556_v10, %v1488_v17  ;;  %v333_v42 = vadd.f32 %v4716_v54, %v201_v15  ;;  %v716_v50 = vmul.f32 %v2806_v61, %v4604_v51  ;;  %v433_v6 = vmul.f32 %v2749_v34, %v4847_v36  ;;  %2248 = vst.msk [vmem:[#allocation8 + $0x58] sm:$0xff] %vm2236_vm3, %v2477_v30 }
 0x190   :  { %v1075_v28 = vadd.f32 %v1011_v37, %v943_v21  ;;  %v1456_v5 = vmul.f32 %v2851_v49, %v4743_v14  ;;  %v5061_v10 = vrot.slane %v4803_v39, 1  ;;  %v848_v51 = vmul.f32 %v2809_v62, %v4756_v32  ;;  %v2127_v15 = vpop.f32.mrf.mxu1  ;;  %2280 = vst.msk [vmem:[#allocation8 + $0x158] sm:$0xff] %vm2236_vm3, %v2525_v25 }
 0x191   :  { %2505 = vmatprep.mubr.msk.f32.mxu0 %vm1658_vm2, %v1620_v8  ;;  %v465_v54 = vadd.f32 %v401_v44, %v333_v42  ;;  %v233_v52 = vmul.f32 %v2739_v29, %v4556_v55  ;;  %v605_v34 = vrot.slane %v4876_v19, 1  ;;  %v1588_v46 = vmul.f32 %v4292_v2, %v1257_v26  ;;  %v1967_v44 = vpop.f32.mrf.mxu0  ;;  %2279 = vst.msk [vmem:[#allocation8 + $0x150] sm:$0xff] %vm2236_vm3, %v2127_v15 }
 0x192   :  { %v626_v60 = vsel %vm608_vm0, %v5061_v10, %v587_v24  ;;  %v1388_v20 = vadd.f32 %v1324_v12, %v1075_v28  ;;  %v1166_v14 = vrot.slane %v109_v63, 2  ;;  %v748_v17 = vmul.f32 %v2806_v61, %v4635_v59  ;;  %2247 = vst.msk [vmem:[#allocation8 + $0x50] sm:$0xff] %vm2236_vm3, %v1967_v44 }
 0x193   :  { %v780_v13 = vadd.f32 %v716_v50, %v465_v54  ;;  %v980_v18 = vmul.f32 %v2818_v3, %v626_v60  ;;  %v365_v37 = vadd.f32 %v301_v47, %v233_v52  ;;  %v1293_v32 = vmul.f32 %v2846_v48, %v4623_v35  ;;  %v5064_v35 = vld [vmem:[#allocation13_spill] sm:$0xff] }
 0x194   :  { %v1520_v24 = vadd.f32 %v1456_v5, %v1388_v20  ;;  %v644_v29 = vsel %vm608_vm0, %v569_v27, %v605_v34  ;;  %v880_v2 = vmul.f32 %v2809_v62, %v4791_v56  ;;  %v5062_v47 = vrot.slane %v4803_v39, 2  ;;  %v5063_v62 = vld [vmem:[#allocation12_spill] sm:$0xff]  ;;  %2272 = vst.msk [vmem:[#allocation8 + $0x118] sm:$0xff] %vm2236_vm3, %v5064_v35  ;;  %v5065_v39 = vld [vmem:[#allocation14_spill] sm:$0xff]  ;;  %v5066_v56 = vld [vmem:[#allocation15_spill] sm:$0xff] }
 0x195   :  { %v912_v55 = vadd.f32 %v848_v51, %v780_v13  ;;  %v497_v21 = vadd.f32 %v433_v6, %v365_v37  ;;  %v1184_v59 = vrot.slane %v4876_v19, 2  ;;  %2240 = vst.msk [vmem:[#allocation8 + $0x18] sm:$0xff] %vm2236_vm3, %v5063_v62  ;;  %2239 = vst.msk [vmem:[#allocation8 + $0x10] sm:$0xff] %vm2236_vm3, %v5065_v39  ;;  %v1425_v33 = vmul.f32 %v2851_v49, %v5068_v23 }
 0x196   :  { %v1652_v63 = vadd.f32 %v1588_v46, %v1520_v24  ;;  %v1203_v61 = vsel %vm1185_vm1, %v5062_v47, %v1166_v14  ;;  %2271 = vst.msk [vmem:[#allocation8 + $0x110] sm:$0xff] %vm2236_vm3, %v5066_v56  ;;  %v1012_v40 = vmul.f32 %v2818_v3, %v644_v29  ;;  %v1325_v9 = vmul.f32 %v2846_v48, %v4651_v41 }
 0x197   :  { %v1044_v38 = vadd.f32 %v980_v18, %v912_v55  ;;  %v812_v53 = vadd.f32 %v748_v17, %v497_v21  ;;  %v2480_v45 = vpop.f32.mrf.mxu0  ;;  %v1557_v11 = vmul.f32 %v2572_v7, %v1203_v61  ;;  %v1221_v4 = vsel %vm1185_vm1, %v1148_v58, %v1184_v59 }
 0x198   :  { %2553 = vmatprep.mubr.msk.f32.mxu1 %vm1658_vm2, %v1652_v63  ;;  %2250 = vst.msk [vmem:[#allocation8 + $0x68] sm:$0xff] %vm2236_vm3, %v2480_v45  ;;  %v1457_v22 = vmul.f32 %v2851_v49, %v4827_v57  ;;  %v1589_v8 = vmul.f32 %v2572_v7, %v1221_v4 }
 0x199   :  { %v1357_v31 = vadd.f32 %v1293_v32, %v1044_v38  ;;  %v944_v43 = vadd.f32 %v880_v2, %v812_v53  ;;  %v1977_v0 = vpop.f32.mrf.mxu0 }
 0x19a   :  { %2249 = vst.msk [vmem:[#allocation8 + $0x60] sm:$0xff] %vm2236_vm3, %v1977_v0 }
 0x19b   :  { %v1489_v3 = vadd.f32 %v1425_v33, %v1357_v31  ;;  %v1076_v27 = vadd.f32 %v1012_v40, %v944_v43 }
 0x19d   :  { %v1621_v12 = vadd.f32 %v1557_v11, %v1489_v3  ;;  %v1389_v19 = vadd.f32 %v1325_v9, %v1076_v27  ;;  %v2528_v26 = vpop.f32.mrf.mxu1 }
 0x19e   :  { %2282 = vst.msk [vmem:[#allocation8 + $0x168] sm:$0xff] %vm2236_vm3, %v2528_v26 }
 0x19f   :  { %2506 = vmatmul.mubr.msk.f32.gmra.mxu0 %vm1658_vm2, %v1621_v12  ;;  %v1521_v48 = vadd.f32 %v1457_v22, %v1389_v19  ;;  %v2137_v41 = vpop.f32.mrf.mxu1 }
 0x1a0   :  { %2281 = vst.msk [vmem:[#allocation8 + $0x160] sm:$0xff] %vm2236_vm3, %v2137_v41 }
 0x1a1   :  { %v1653_v1 = vadd.f32 %v1589_v8, %v1521_v48 }
 0x1a3   :  { %2554 = vmatmul.mubr.msk.f32.gmra.mxu1 %vm1658_vm2, %v1653_v1 }
 0x1ad   :  { %v2483_v36 = vpop.f32.mrf.mxu0 }
 0x1ae   :  { %2252 = vst.msk [vmem:[#allocation8 + $0x78] sm:$0xff] %vm2236_vm3, %v2483_v36 }
 0x1af   :  { %v1987_v58 = vpop.f32.mrf.mxu0 }
 0x1b0   :  { %2251 = vst.msk [vmem:[#allocation8 + $0x70] sm:$0xff] %vm2236_vm3, %v1987_v58 }
 0x1b3   :  { %v2531_v49 = vpop.f32.mrf.mxu1 }
 0x1b4   :  { %2284 = vst.msk [vmem:[#allocation8 + $0x178] sm:$0xff] %vm2236_vm3, %v2531_v49 }
 0x1b5   :  { %v2147_v57 = vpop.f32.mrf.mxu1 }
 0x1b6   :  { %2283 = vst.msk [vmem:[#allocation8 + $0x170] sm:$0xff] %vm2236_vm3, %v2147_v57 }
 0x1c3   :  { %v2486_v42 = vpop.f32.mrf.mxu0 }
 0x1c4   :  { %2254 = vst.msk [vmem:[#allocation8 + $0x88] sm:$0xff] %vm2236_vm3, %v2486_v42 }
 0x1c5   :  { %v1997_v50 = vpop.f32.mrf.mxu0 }
 0x1c6   :  { %2253 = vst.msk [vmem:[#allocation8 + $0x80] sm:$0xff] %vm2236_vm3, %v1997_v50 }
 0x1c9   :  { %v2534_v30 = vpop.f32.mrf.mxu1 }
 0x1ca   :  { %2286 = vst.msk [vmem:[#allocation8 + $0x188] sm:$0xff] %vm2236_vm3, %v2534_v30 }
 0x1cb   :  { %v2157_v25 = vpop.f32.mrf.mxu1 }
 0x1cc   :  { %2285 = vst.msk [vmem:[#allocation8 + $0x180] sm:$0xff] %vm2236_vm3, %v2157_v25 }
 0x1d9   :  { %v2489_v6 = vpop.f32.mrf.mxu0 }
 0x1da   :  { %2256 = vst.msk [vmem:[#allocation8 + $0x98] sm:$0xff] %vm2236_vm3, %v2489_v6 }
 0x1db   :  { %v2007_v28 = vpop.f32.mrf.mxu0 }
 0x1dc   :  { %2255 = vst.msk [vmem:[#allocation8 + $0x90] sm:$0xff] %vm2236_vm3, %v2007_v28 }
 0x1df   :  { %v2537_v5 = vpop.f32.mrf.mxu1 }
 0x1e0   :  { %2288 = vst.msk [vmem:[#allocation8 + $0x198] sm:$0xff] %vm2236_vm3, %v2537_v5 }
 0x1e1   :  { %v2167_v10 = vpop.f32.mrf.mxu1 }
 0x1e2   :  { %2287 = vst.msk [vmem:[#allocation8 + $0x190] sm:$0xff] %vm2236_vm3, %v2167_v10 }
 0x1ef   :  { %v2492_v60 = vpop.f32.mrf.mxu0 }
 0x1f0   :  { %2258 = vst.msk [vmem:[#allocation8 + $0xa8] sm:$0xff] %vm2236_vm3, %v2492_v60 }
 0x1f1   :  { %v2017_v54 = vpop.f32.mrf.mxu0 }
 0x1f2   :  { %2257 = vst.msk [vmem:[#allocation8 + $0xa0] sm:$0xff] %vm2236_vm3, %v2017_v54 }
 0x1f5   :  { %v2540_v51 = vpop.f32.mrf.mxu1 }
 0x1f6   :  { %2290 = vst.msk [vmem:[#allocation8 + $0x1a8] sm:$0xff] %vm2236_vm3, %v2540_v51 }
 0x1f7   :  { %v2177_v52 = vpop.f32.mrf.mxu1 }
 0x1f8   :  { %2289 = vst.msk [vmem:[#allocation8 + $0x1a0] sm:$0xff] %vm2236_vm3, %v2177_v52 }
 0x205   :  { %v2495_v34 = vpop.f32.mrf.mxu0 }
 0x206   :  { %2260 = vst.msk [vmem:[#allocation8 + $0xb8] sm:$0xff] %vm2236_vm3, %v2495_v34 }
 0x207   :  { %v2027_v20 = vpop.f32.mrf.mxu0 }
 0x208   :  { %2259 = vst.msk [vmem:[#allocation8 + $0xb0] sm:$0xff] %vm2236_vm3, %v2027_v20 }
 0x20b   :  { %v2543_v46 = vpop.f32.mrf.mxu1 }
 0x20c   :  { %2292 = vst.msk [vmem:[#allocation8 + $0x1b8] sm:$0xff] %vm2236_vm3, %v2543_v46 }
 0x20d   :  { %v2187_v14 = vpop.f32.mrf.mxu1 }
 0x20e   :  { %2291 = vst.msk [vmem:[#allocation8 + $0x1b0] sm:$0xff] %vm2236_vm3, %v2187_v14 }
 0x21b   :  { %v2498_v13 = vpop.f32.mrf.mxu0 }
 0x21c   :  { %2262 = vst.msk [vmem:[#allocation8 + $0xc8] sm:$0xff] %vm2236_vm3, %v2498_v13 }
 0x21d   :  { %v2037_v18 = vpop.f32.mrf.mxu0 }
 0x21e   :  { %2261 = vst.msk [vmem:[#allocation8 + $0xc0] sm:$0xff] %vm2236_vm3, %v2037_v18 }
 0x221   :  { %v2546_v37 = vpop.f32.mrf.mxu1 }
 0x222   :  { %2294 = vst.msk [vmem:[#allocation8 + $0x1c8] sm:$0xff] %vm2236_vm3, %v2546_v37 }
 0x223   :  { %v2197_v17 = vpop.f32.mrf.mxu1 }
 0x224   :  { %2293 = vst.msk [vmem:[#allocation8 + $0x1c0] sm:$0xff] %vm2236_vm3, %v2197_v17 }
 0x231   :  { %v2501_v44 = vpop.f32.mrf.mxu0 }
 0x232   :  { %2264 = vst.msk [vmem:[#allocation8 + $0xd8] sm:$0xff] %vm2236_vm3, %v2501_v44 }
 0x233   :  { %v2047_v15 = vpop.f32.mrf.mxu0 }
 0x234   :  { %2263 = vst.msk [vmem:[#allocation8 + $0xd0] sm:$0xff] %vm2236_vm3, %v2047_v15 }
 0x237   :  { %v2549_v24 = vpop.f32.mrf.mxu1 }
 0x238   :  { %2296 = vst.msk [vmem:[#allocation8 + $0x1d8] sm:$0xff] %vm2236_vm3, %v2549_v24 }
 0x239   :  { %v2207_v32 = vpop.f32.mrf.mxu1 }
 0x23a   :  { %2295 = vst.msk [vmem:[#allocation8 + $0x1d0] sm:$0xff] %vm2236_vm3, %v2207_v32 }
 0x249   :  { %v2504_v29 = vpop.f32.mrf.mxu0 }
 0x24a   :  { %2266 = vst.msk [vmem:[#allocation8 + $0xe8] sm:$0xff] %vm2236_vm3, %v2504_v29 }
 0x24b   :  { %v2057_v55 = vpop.f32.mrf.mxu0 }
 0x24c   :  { %2265 = vst.msk [vmem:[#allocation8 + $0xe0] sm:$0xff] %vm2236_vm3, %v2057_v55 }
 0x24e   :  { %v2552_v21 = vpop.f32.mrf.mxu1 }
 0x24f   :  { %2298 = vst.msk [vmem:[#allocation8 + $0x1e8] sm:$0xff] %vm2236_vm3, %v2552_v21 }
 0x250   :  { %v2217_v2 = vpop.f32.mrf.mxu1 }
 0x251   :  { %2297 = vst.msk [vmem:[#allocation8 + $0x1e0] sm:$0xff] %vm2236_vm3, %v2217_v2 }
 0x25f   :  { %v2507_v63 = vpop.f32.mrf.mxu0 }
 0x260   :  { %2268 = vst.msk [vmem:[#allocation8 + $0xf8] sm:$0xff] %vm2236_vm3, %v2507_v63 }
 0x261   :  { %v2067_v47 = vpop.f32.mrf.mxu0 }
 0x262   :  { %2267 = vst.msk [vmem:[#allocation8 + $0xf0] sm:$0xff] %vm2236_vm3, %v2067_v47 }
 0x263   :  { %v2555_v61 = vpop.f32.mrf.mxu1 }
 0x264   :  { %2300 = vst.msk [vmem:[#allocation8 + $0x1f8] sm:$0xff] %vm2236_vm3, %v2555_v61 }
 0x265   :  { %v2227_v59 = vpop.f32.mrf.mxu1 }
 0x266   :  { %2299 = vst.msk [vmem:[#allocation8 + $0x1f0] sm:$0xff] %vm2236_vm3, %v2227_v59 }
 0x267   :  { %2644 = shalt.err (!%p2641_p5)
}
 0x268   :  { %2312 = dma.vmem_to_hbm [thread:$0]  %s2307_s2, 8192, %s5021_s3, [#allocation4], %s2661_s17, %s2661_s17, %s2662_s18  }
 0x269   :  { %2657 = dma.done.wait [#allocation4], 8192  }
 0x26a   :  { %2658 = vsyncadd [#allocation4], 4294959104 }
 0x26b   :  { %2316 = vsyncpa [#allocation3], 1 }
 0x26c   :  { %2317 = vsyncpa [#allocation6], 1 }
 0x26d   :  { %2318 = vsyncpa [#allocation4], 1 }

</bundles_post_ra>
